<compile_context>
chip_gen: v7x
topology: tpu7x:2x2x1
jax: 0.10.0
libtpu: 0.0.40
codegen_flags: <defaults>
</compile_context>

<pallas_src>
import functools

import jax
import jax.numpy as jnp
from jax.experimental import pallas as pl
from jax.experimental.pallas import tpu as pltpu


# ---------------------------------------------------------------------------
# Single fused kernel: path LSTM (+ control max-pool) and NTN matching, per batch tile.
# ---------------------------------------------------------------------------
def fused_expan_tmatch_kernel(hu_ref, vr_ref, qf_ref, x_ref, lens_ref, maxlen_ref,
                              h0_ref, c0_ref, wih_ref, whh_ref, b_ref,
                              wntn_ref, vstk_ref, bntn_ref, u_ref,
                              out_ref, *, n_sub):
    tb, r = hu_ref.shape                      # batch tile rows, r_dim (= in_dim)
    T = x_ref.shape[0] // tb                  # static sequence length
    H = whh_ref.shape[0]
    K = bntn_ref.shape[1]
    sub = tb // n_sub                         # rows per independent recurrence sub-block

    f32 = jnp.float32
    bf16 = jnp.bfloat16

    # --- Hoisted LSTM input projection + control projection: ONE bf16 MXU matmul ---
    x = x_ref[...]                                                     # (T*tb, Din) bf16
    gates_x = jnp.dot(x, wih_ref[...], preferred_element_type=f32) + b_ref[...]
    gx_rec = gates_x[:, :4 * H]                                        # [i | f | o | g]
    max_len = maxlen_ref[0]                                            # scalar int32 (SMEM)

    # Per-sub-block state: independent chains let the LLO scheduler hide one sub-block's
    # MXU latency behind the other's EUP/VALU work.
    hs, cs, ms, ctrls, lens_col, lens_bc = [], [], [], [], [], []
    for s in range(n_sub):
        r0 = s * sub
        hs.append(h0_ref[r0:r0 + sub, :])
        cs.append(c0_ref[r0:r0 + sub, :])
        ms.append(jnp.full((sub, H), -jnp.inf, f32))
        # control = ReLU(x_0 @ Wc): folded into columns [4H:5H] of the input projection
        ctrls.append(jnp.maximum(gates_x[r0:r0 + sub, 4 * H:5 * H], 0.0))
        lc = lens_ref[r0:r0 + sub, :]                                  # (sub, 1) int32
        lens_col.append(lc)
        lens_bc.append(jnp.broadcast_to(lc, (sub, H)))                 # hoisted broadcast

    # --- Fully unrolled recurrence (small static T); only h @ W_hh on the MXU per step ---
    for t in range(T):
        for s in range(n_sub):
            row0 = t * tb + s * sub
            gates = gx_rec[row0:row0 + sub, :] + jnp.dot(
                hs[s].astype(bf16), whh_ref[...], preferred_element_type=f32)
            sg = jax.nn.sigmoid(gates[:, :3 * H])                      # i, f, o: one EUP pass
            g_g = jnp.tanh(gates[:, 3 * H:4 * H])                      # g
            i_g = sg[:, 0:H]
            f_g = sg[:, H:2 * H]
            o_g = sg[:, 2 * H:3 * H]
            c_new = f_g * cs[s] + i_g * g_g
            h_new = o_g * jnp.tanh(c_new)
            valid = t < lens_bc[s]                                     # (sub, H) bool
            hs[s] = jnp.where(valid, h_new, hs[s])
            cs[s] = jnp.where(valid, c_new, cs[s])
            ms[s] = jnp.where(valid, jnp.maximum(ms[s], ctrls[s] * h_new), ms[s])

    # pad_packed_sequence zero-pads rows shorter than the WHOLE-batch max; those zeros take
    # part in the max (control is ReLU-ed, so c*0 == 0).  Guard lens == 0 (would leave -inf).
    parts = []
    for s in range(n_sub):
        mf = jnp.where(lens_col[s] < max_len, jnp.maximum(ms[s], 0.0), ms[s])
        parts.append(jnp.where(lens_col[s] > 0, mf, 0.0))
    hpu = parts[0] if n_sub == 1 else jnp.concatenate(parts, axis=0)   # (tb, H) f32

    # --- Fused NTN matching (no HBM round-trip of hpu) ---
    hu = hu_ref[...]
    vrr = vr_ref[...]
    qf = qf_ref[...]
    # Lane-dense concat; ur = [hu, hpu] is handled implicitly via zero-padded / stacked weights.
    z = jnp.concatenate([hu, hpu.astype(bf16), vrr, qf], axis=-1)      # (tb, Z) bf16

    # Bilinear term: t1[:, k*r + j] = sum_i ur_i W_k[i, j]; bil_k = sum_j t1 * vr_j.
    # Per-k contraction on VPU/XLU (no lane replication, no MXU seg-matmul).
    t1 = jnp.dot(z, wntn_ref[...], preferred_element_type=f32)         # (tb, K*r)
    vrf = vrr.astype(f32)
    bil = jnp.concatenate(
        [jnp.sum(t1[:, kk * r:(kk + 1) * r] * vrf, axis=-1, keepdims=True)
         for kk in range(K)], axis=-1)                                 # (tb, K)

    # Linear term: one MXU push against the pre-stacked [Vl; Vr; Vq].
    lin = jnp.dot(z, vstk_ref[...], preferred_element_type=f32)        # (tb, K)
    act = jnp.tanh(bil + lin + bntn_ref[...])                          # (tb, K)
    # Final u-projection as a VPU mul + tiny lane reduce.
    out_ref[...] = jnp.sum(act * u_ref[...], axis=-1, keepdims=True)   # (tb, 1)


# ---------------------------------------------------------------------------
# Wrappers
# ---------------------------------------------------------------------------
def expan_tmatch_fused_call(hu, vr, qf, x2, lens_i, max_len, p, *, tb):
    B, Din = hu.shape
    T = x2.shape[0] // B
    H = p["w_hh"].shape[0]
    K = p["ntn_b"].shape[1]
    Z = p["ntn_W_big"].shape[0]
    assert B % tb == 0 and tb % 8 == 0
    n_sub = 2 if tb % 16 == 0 else 1          # independent recurrence sub-blocks (>= 8 rows each)

    batched = lambda i: (i, 0)
    const = lambda i: (0, 0)
    kern = functools.partial(fused_expan_tmatch_kernel, n_sub=n_sub)

    return pl.pallas_call(
        kern,
        out_shape=jax.ShapeDtypeStruct((B, 1), jnp.float32),
        grid=(B // tb,),
        in_specs=[
            pl.BlockSpec((tb, Din), batched),                      # hu
            pl.BlockSpec((tb, Din), batched),                      # vr
            pl.BlockSpec((tb, Din), batched),                      # qf
            pl.BlockSpec((T * tb, Din), batched),                  # x (time-major within tile)
            pl.BlockSpec((tb, 1), batched),                        # lens (int32)
            pl.BlockSpec(memory_space=pltpu.MemorySpace.SMEM),     # batch-max of lens (scalar)
            pl.BlockSpec((tb, H), batched),                        # h0
            pl.BlockSpec((tb, H), batched),                        # c0
            pl.BlockSpec((Din, 5 * H), const),                     # W_ih | W_ctrl   (bf16)
            pl.BlockSpec((H, 4 * H), const),                       # W_hh            (bf16)
            pl.BlockSpec((1, 5 * H), const),                       # LSTM bias (+0 for ctrl)
            pl.BlockSpec((Z, K * Din), const),                     # NTN bilinear W  (bf16)
            pl.BlockSpec((Z, K), const),                           # NTN [Vl;Vr;Vq]  (bf16)
            pl.BlockSpec((1, K), const),                           # NTN bias
            pl.BlockSpec((1, K), const),                           # NTN u row
        ],
        out_specs=pl.BlockSpec((tb, 1), batched),
        compiler_params=pltpu.CompilerParams(
            dimension_semantics=("parallel",),                     # 2 TCs on v7x
            vmem_limit_bytes=32 * 1024 * 1024),                    # safe on 64 MiB (v7x) VMEM
    )(hu, vr, qf, x2, lens_i, max_len,
      p["h0"], p["c0"], p["w_ih5"], p["w_hh"], p["b_lstm5"],
      p["ntn_W_big"], p["ntn_V_stk"], p["ntn_b"], p["ntn_u_row"])


@functools.partial(jax.jit, static_argnames=("tb",))
def expan_tmatch_forward(params, q, us, vs, pu, lens, *, tb=None):
    emb = params["embedding"]
    B, T = pu.shape
    if tb is None:
        tb = B
    ntiles = B // tb

    qf = jnp.take(emb, q, axis=0).astype(jnp.bfloat16)     # (B, in_dim)
    hu = jnp.take(emb, us, axis=0).astype(jnp.bfloat16)    # (B, in_dim)   -- 'r'
    vr = jnp.take(emb, vs, axis=0).astype(jnp.bfloat16)    # (B, in_dim)

    # Gather path embeddings already ordered tile-major / time-major-within-tile, so the kernel
    # block is exactly the consumption order (no in-kernel reshape/transpose).
    pu_idx = pu.reshape(ntiles, tb, T).transpose(0, 2, 1).reshape(-1)
    x2 = jnp.take(emb, pu_idx, axis=0).astype(jnp.bfloat16)            # (B*T, in_dim)

    lens_i = lens.astype(jnp.int32).reshape(-1, 1)                     # (B, 1)
    max_len = jnp.max(lens_i).reshape(1).astype(jnp.int32)             # whole-batch max
    return expan_tmatch_fused_call(hu, vr, qf, x2, lens_i, max_len, params, tb=tb)


# ---------------------------------------------------------------------------
# Deterministic parameter construction (fused bf16 weight layouts are prepared here).
# ---------------------------------------------------------------------------
def make_params(key, vocab, in_dim, out_dim, B, k):
    H = out_dim
    l_dim = in_dim + out_dim          # mode 'rp': ur = [hu, hpu]
    r_dim = in_dim
    ks = jax.random.split(key, 12)
    s = 0.1

    # LSTM weights generated directly in gate-column order [i, f, o, g].
    # NOTE: porting real torch LSTM weights requires transposing (4H, Din) -> (Din, 4H)
    # and permuting gate blocks from torch's [i, f, g, o] to [i, f, o, g].
    w_ih = s * jax.random.normal(ks[1], (in_dim, 4 * H), jnp.float32)
    w_ctrl = s * jax.random.normal(ks[2], (in_dim, H), jnp.float32)
    w_hh = s * jax.random.normal(ks[3], (H, 4 * H), jnp.float32)
    b_lstm = s * jax.random.normal(ks[4], (1, 4 * H), jnp.float32)

    ntn_W = s * jax.random.normal(ks[7], (l_dim, k * r_dim), jnp.float32)
    ntn_Vl = s * jax.random.normal(ks[8], (l_dim, k), jnp.float32)
    ntn_Vr = s * jax.random.normal(ks[9], (r_dim, k), jnp.float32)
    ntn_Vq = s * jax.random.normal(ks[10], (r_dim, k), jnp.float32)

    return {
        "embedding": s * jax.random.normal(ks[0], (vocab, in_dim), jnp.float32),
        # Input projection with the control projection folded in: columns [i|f|o|g|ctrl].
        "w_ih5":  jnp.concatenate([w_ih, w_ctrl], axis=1).astype(jnp.bfloat16),
        "w_hh":   w_hh.astype(jnp.bfloat16),
        "b_lstm5": jnp.concatenate([b_lstm, jnp.zeros((1, H), jnp.float32)], axis=1),
        # torch init_hidden draws randn per call; here deterministic (documented deviation).
        "h0": s * jax.random.normal(ks[5], (B, H), jnp.float32),
        "c0": s * jax.random.normal(ks[6], (B, H), jnp.float32),
        # Fused NTN layouts for z = [hu, hpu, vr, qf] (Z = l_dim + 2*r_dim lanes):
        #   W_big: (l_dim, k*r) bilinear weight zero-padded to (Z, k*r)
        #   V_stk: [Vl; Vr; Vq] stacked to (Z, k)
        "ntn_W_big": jnp.concatenate(
            [ntn_W, jnp.zeros((2 * r_dim, k * r_dim), jnp.float32)], axis=0
        ).astype(jnp.bfloat16),
        "ntn_V_stk": jnp.concatenate([ntn_Vl, ntn_Vr, ntn_Vq], axis=0).astype(jnp.bfloat16),
        "ntn_b":     jnp.zeros((1, k), jnp.float32),
        "ntn_u_row": s * jax.random.normal(ks[11], (1, k), jnp.float32),
    }


if __name__ == "__main__":
    B, T = 32, 8
    vocab, in_dim, out_dim, k = 64, 32, 32, 4
    tb = 16   # batch tile per grid step (grid of 2 here; scale to 128-512 for real workloads)

    key = jax.random.PRNGKey(0)
    kp, kq, ku, kv, kpu, kl = jax.random.split(key, 6)

    params = make_params(kp, vocab, in_dim, out_dim, B, k)

    q = jax.random.randint(kq, (B,), 0, vocab, dtype=jnp.int32)
    us = jax.random.randint(ku, (B,), 0, vocab, dtype=jnp.int32)
    vs = jax.random.randint(kv, (B,), 0, vocab, dtype=jnp.int32)
    pu = jax.random.randint(kpu, (B, T), 0, vocab, dtype=jnp.int32)
    lens = jax.random.randint(kl, (B,), 2, T + 1, dtype=jnp.int32)   # 2..T valid steps per row

    scores = expan_tmatch_forward(params, q, us, vs, pu, lens, tb=tb)
    scores = jax.block_until_ready(scores)
    assert scores.shape == (B, 1) and scores.dtype == jnp.float32
    assert bool(jnp.all(jnp.isfinite(scores)))
    print("KERNEL_OK")
</pallas_src>

<mosaic_0001>
module attributes {stable_mosaic.version = 11 : i64} {
  func.func @fused_expan_tmatch_kernel(%arg0: i32, %arg1: memref<16x32xbf16, #tpu.memory_space<vmem>>, %arg2: memref<16x32xbf16, #tpu.memory_space<vmem>>, %arg3: memref<16x32xbf16, #tpu.memory_space<vmem>>, %arg4: memref<128x32xbf16, #tpu.memory_space<vmem>>, %arg5: memref<16x1xi32, #tpu.memory_space<vmem>>, %arg6: memref<1xi32, #tpu.memory_space<smem>>, %arg7: memref<16x32xf32, #tpu.memory_space<vmem>>, %arg8: memref<16x32xf32, #tpu.memory_space<vmem>>, %arg9: memref<32x160xbf16, #tpu.memory_space<vmem>>, %arg10: memref<32x128xbf16, #tpu.memory_space<vmem>>, %arg11: memref<1x160xf32, #tpu.memory_space<vmem>>, %arg12: memref<128x128xbf16, #tpu.memory_space<vmem>>, %arg13: memref<128x4xbf16, #tpu.memory_space<vmem>>, %arg14: memref<1x4xf32, #tpu.memory_space<vmem>>, %arg15: memref<1x4xf32, #tpu.memory_space<vmem>>, %arg16: memref<16x1xf32, #tpu.memory_space<vmem>>) attributes {dimension_semantics = [#tpu.dimension_semantics<parallel>], iteration_bounds = array<i64: 2>, scalar_prefetch = 0 : i64, scratch_operands = 0 : i64, tpu.core_type = #tpu.core_type<tc>, window_params = [{transform_indices = @transform_0, window_bounds = array<i64: 16, 32>}, {transform_indices = @transform_1, window_bounds = array<i64: 16, 32>}, {transform_indices = @transform_2, window_bounds = array<i64: 16, 32>}, {transform_indices = @transform_3, window_bounds = array<i64: 128, 32>}, {transform_indices = @transform_4, window_bounds = array<i64: 16, 1>}, {transform_indices = @transform_5, window_bounds = array<i64: 1>}, {transform_indices = @transform_6, window_bounds = array<i64: 16, 32>}, {transform_indices = @transform_7, window_bounds = array<i64: 16, 32>}, {pipeline_mode = #tpu.pipeline_mode<synchronous>, transform_indices = @transform_8, window_bounds = array<i64: 32, 160>}, {pipeline_mode = #tpu.pipeline_mode<synchronous>, transform_indices = @transform_9, window_bounds = array<i64: 32, 128>}, {pipeline_mode = #tpu.pipeline_mode<synchronous>, transform_indices = @transform_10, window_bounds = array<i64: 1, 160>}, {pipeline_mode = #tpu.pipeline_mode<synchronous>, transform_indices = @transform_11, window_bounds = array<i64: 128, 128>}, {pipeline_mode = #tpu.pipeline_mode<synchronous>, transform_indices = @transform_12, window_bounds = array<i64: 128, 4>}, {pipeline_mode = #tpu.pipeline_mode<synchronous>, transform_indices = @transform_13, window_bounds = array<i64: 1, 4>}, {pipeline_mode = #tpu.pipeline_mode<synchronous>, transform_indices = @transform_14, window_bounds = array<i64: 1, 4>}, {transform_indices = @transform_15, window_bounds = array<i64: 16, 1>}]} {
    %c0 = arith.constant 0 : index
    %c0_0 = arith.constant 0 : index
    %0 = vector.load %arg4[%c0, %c0_0] : memref<128x32xbf16, #tpu.memory_space<vmem>>, vector<128x32xbf16>
    %c0_1 = arith.constant 0 : index
    %c0_2 = arith.constant 0 : index
    %1 = vector.load %arg9[%c0_1, %c0_2] : memref<32x160xbf16, #tpu.memory_space<vmem>>, vector<32x160xbf16>
    %cst = arith.constant dense<0.000000e+00> : vector<128x160xf32>
    %2 = tpu.matmul %0, %1, %cst {dimension_numbers = #tpu.dot_dimension_numbers<[1], [0], [0], [1], [0, 0, 1, 1], [], []>} : vector<128x32xbf16>, vector<32x160xbf16>, vector<128x160xf32> -> vector<128x160xf32>
    %c0_3 = arith.constant 0 : index
    %c0_4 = arith.constant 0 : index
    %3 = vector.load %arg11[%c0_3, %c0_4] : memref<1x160xf32, #tpu.memory_space<vmem>>, vector<1x160xf32>
    %4 = vector.broadcast %3 : vector<1x160xf32> to vector<128x160xf32>
    %5 = arith.addf %2, %4 : vector<128x160xf32>
    %6 = vector.extract_strided_slice %5 {offsets = [0, 0], sizes = [128, 128], strides = [1, 1]} : vector<128x160xf32> to vector<128x128xf32>
    %c0_5 = arith.constant 0 : index
    %7 = memref.load %arg6[%c0_5] : memref<1xi32, #tpu.memory_space<smem>>
    %c0_6 = arith.constant 0 : index
    %c0_7 = arith.constant 0 : index
    %8 = vector.load %arg7[%c0_6, %c0_7] : memref<16x32xf32, #tpu.memory_space<vmem>>, vector<8x32xf32>
    %c0_8 = arith.constant 0 : index
    %c0_9 = arith.constant 0 : index
    %9 = vector.load %arg8[%c0_8, %c0_9] : memref<16x32xf32, #tpu.memory_space<vmem>>, vector<8x32xf32>
    %cst_10 = arith.constant 0xFF800000 : f32
    %10 = vector.broadcast %cst_10 : f32 to vector<8x32xf32>
    %11 = vector.extract_strided_slice %5 {offsets = [0, 128], sizes = [8, 32], strides = [1, 1]} : vector<128x160xf32> to vector<8x32xf32>
    %cst_11 = arith.constant 0.000000e+00 : f32
    %12 = vector.broadcast %cst_11 : f32 to vector<8x32xf32>
    %13 = arith.maximumf %11, %12 : vector<8x32xf32>
    %c0_12 = arith.constant 0 : index
    %c0_13 = arith.constant 0 : index
    %14 = vector.load %arg5[%c0_12, %c0_13] : memref<16x1xi32, #tpu.memory_space<vmem>>, vector<8x1xi32>
    %15 = vector.shape_cast %14 : vector<8x1xi32> to vector<8x1xi32>
    %16 = vector.broadcast %15 : vector<8x1xi32> to vector<8x32xi32>
    %c8 = arith.constant 8 : index
    %c0_14 = arith.constant 0 : index
    %17 = vector.load %arg7[%c8, %c0_14] : memref<16x32xf32, #tpu.memory_space<vmem>>, vector<8x32xf32>
    %c8_15 = arith.constant 8 : index
    %c0_16 = arith.constant 0 : index
    %18 = vector.load %arg8[%c8_15, %c0_16] : memref<16x32xf32, #tpu.memory_space<vmem>>, vector<8x32xf32>
    %cst_17 = arith.constant 0xFF800000 : f32
    %19 = vector.broadcast %cst_17 : f32 to vector<8x32xf32>
    %20 = vector.extract_strided_slice %5 {offsets = [8, 128], sizes = [8, 32], strides = [1, 1]} : vector<128x160xf32> to vector<8x32xf32>
    %cst_18 = arith.constant 0.000000e+00 : f32
    %21 = vector.broadcast %cst_18 : f32 to vector<8x32xf32>
    %22 = arith.maximumf %20, %21 : vector<8x32xf32>
    %c8_19 = arith.constant 8 : index
    %c0_20 = arith.constant 0 : index
    %23 = vector.load %arg5[%c8_19, %c0_20] : memref<16x1xi32, #tpu.memory_space<vmem>>, vector<8x1xi32>
    %24 = vector.shape_cast %23 : vector<8x1xi32> to vector<8x1xi32>
    %25 = vector.broadcast %24 : vector<8x1xi32> to vector<8x32xi32>
    %26 = vector.extract_strided_slice %6 {offsets = [0, 0], sizes = [8, 128], strides = [1, 1]} : vector<128x128xf32> to vector<8x128xf32>
    %27 = arith.truncf %8 : vector<8x32xf32> to vector<8x32xbf16>
    %c0_21 = arith.constant 0 : index
    %c0_22 = arith.constant 0 : index
    %28 = vector.load %arg10[%c0_21, %c0_22] : memref<32x128xbf16, #tpu.memory_space<vmem>>, vector<32x128xbf16>
    %cst_23 = arith.constant dense<0.000000e+00> : vector<8x128xf32>
    %29 = tpu.matmul %27, %28, %cst_23 {dimension_numbers = #tpu.dot_dimension_numbers<[1], [0], [0], [1], [0, 0, 1, 1], [], []>} : vector<8x32xbf16>, vector<32x128xbf16>, vector<8x128xf32> -> vector<8x128xf32>
    %30 = arith.addf %26, %29 : vector<8x128xf32>
    %31 = vector.extract_strided_slice %30 {offsets = [0, 0], sizes = [8, 96], strides = [1, 1]} : vector<8x128xf32> to vector<8x96xf32>
    %32 = arith.negf %31 : vector<8x96xf32>
    %33 = math.exp %32 : vector<8x96xf32>
    %cst_24 = arith.constant 1.000000e+00 : f32
    %34 = vector.broadcast %cst_24 : f32 to vector<8x96xf32>
    %35 = arith.addf %34, %33 : vector<8x96xf32>
    %36 = arith.divf %34, %35 : vector<8x96xf32>
    %37 = vector.extract_strided_slice %30 {offsets = [0, 96], sizes = [8, 32], strides = [1, 1]} : vector<8x128xf32> to vector<8x32xf32>
    %38 = math.tanh %37 : vector<8x32xf32>
    %39 = vector.extract_strided_slice %36 {offsets = [0, 0], sizes = [8, 32], strides = [1, 1]} : vector<8x96xf32> to vector<8x32xf32>
    %40 = vector.extract_strided_slice %36 {offsets = [0, 32], sizes = [8, 32], strides = [1, 1]} : vector<8x96xf32> to vector<8x32xf32>
    %41 = vector.extract_strided_slice %36 {offsets = [0, 64], sizes = [8, 32], strides = [1, 1]} : vector<8x96xf32> to vector<8x32xf32>
    %42 = arith.mulf %40, %9 : vector<8x32xf32>
    %43 = arith.mulf %39, %38 : vector<8x32xf32>
    %44 = arith.addf %42, %43 : vector<8x32xf32>
    %45 = math.tanh %44 : vector<8x32xf32>
    %46 = arith.mulf %41, %45 : vector<8x32xf32>
    %c0_i32 = arith.constant 0 : i32
    %47 = vector.broadcast %c0_i32 : i32 to vector<8x32xi32>
    %48 = arith.cmpi sgt, %16, %47 : vector<8x32xi32>
    %49 = arith.select %48, %46, %8 : vector<8x32xi1>, vector<8x32xf32>
    %50 = arith.select %48, %44, %9 : vector<8x32xi1>, vector<8x32xf32>
    %51 = arith.mulf %13, %46 : vector<8x32xf32>
    %52 = arith.maximumf %10, %51 : vector<8x32xf32>
    %53 = arith.select %48, %52, %10 : vector<8x32xi1>, vector<8x32xf32>
    %54 = vector.extract_strided_slice %6 {offsets = [8, 0], sizes = [8, 128], strides = [1, 1]} : vector<128x128xf32> to vector<8x128xf32>
    %55 = arith.truncf %17 : vector<8x32xf32> to vector<8x32xbf16>
    %c0_25 = arith.constant 0 : index
    %c0_26 = arith.constant 0 : index
    %56 = vector.load %arg10[%c0_25, %c0_26] : memref<32x128xbf16, #tpu.memory_space<vmem>>, vector<32x128xbf16>
    %cst_27 = arith.constant dense<0.000000e+00> : vector<8x128xf32>
    %57 = tpu.matmul %55, %56, %cst_27 {dimension_numbers = #tpu.dot_dimension_numbers<[1], [0], [0], [1], [0, 0, 1, 1], [], []>} : vector<8x32xbf16>, vector<32x128xbf16>, vector<8x128xf32> -> vector<8x128xf32>
    %58 = arith.addf %54, %57 : vector<8x128xf32>
    %59 = vector.extract_strided_slice %58 {offsets = [0, 0], sizes = [8, 96], strides = [1, 1]} : vector<8x128xf32> to vector<8x96xf32>
    %60 = arith.negf %59 : vector<8x96xf32>
    %61 = math.exp %60 : vector<8x96xf32>
    %cst_28 = arith.constant 1.000000e+00 : f32
    %62 = vector.broadcast %cst_28 : f32 to vector<8x96xf32>
    %63 = arith.addf %62, %61 : vector<8x96xf32>
    %64 = arith.divf %62, %63 : vector<8x96xf32>
    %65 = vector.extract_strided_slice %58 {offsets = [0, 96], sizes = [8, 32], strides = [1, 1]} : vector<8x128xf32> to vector<8x32xf32>
    %66 = math.tanh %65 : vector<8x32xf32>
    %67 = vector.extract_strided_slice %64 {offsets = [0, 0], sizes = [8, 32], strides = [1, 1]} : vector<8x96xf32> to vector<8x32xf32>
    %68 = vector.extract_strided_slice %64 {offsets = [0, 32], sizes = [8, 32], strides = [1, 1]} : vector<8x96xf32> to vector<8x32xf32>
    %69 = vector.extract_strided_slice %64 {offsets = [0, 64], sizes = [8, 32], strides = [1, 1]} : vector<8x96xf32> to vector<8x32xf32>
    %70 = arith.mulf %68, %18 : vector<8x32xf32>
    %71 = arith.mulf %67, %66 : vector<8x32xf32>
    %72 = arith.addf %70, %71 : vector<8x32xf32>
    %73 = math.tanh %72 : vector<8x32xf32>
    %74 = arith.mulf %69, %73 : vector<8x32xf32>
    %c0_i32_29 = arith.constant 0 : i32
    %75 = vector.broadcast %c0_i32_29 : i32 to vector<8x32xi32>
    %76 = arith.cmpi sgt, %25, %75 : vector<8x32xi32>
    %77 = arith.select %76, %74, %17 : vector<8x32xi1>, vector<8x32xf32>
    %78 = arith.select %76, %72, %18 : vector<8x32xi1>, vector<8x32xf32>
    %79 = arith.mulf %22, %74 : vector<8x32xf32>
    %80 = arith.maximumf %19, %79 : vector<8x32xf32>
    %81 = arith.select %76, %80, %19 : vector<8x32xi1>, vector<8x32xf32>
    %82 = vector.extract_strided_slice %6 {offsets = [16, 0], sizes = [8, 128], strides = [1, 1]} : vector<128x128xf32> to vector<8x128xf32>
    %83 = arith.truncf %49 : vector<8x32xf32> to vector<8x32xbf16>
    %c0_30 = arith.constant 0 : index
    %c0_31 = arith.constant 0 : index
    %84 = vector.load %arg10[%c0_30, %c0_31] : memref<32x128xbf16, #tpu.memory_space<vmem>>, vector<32x128xbf16>
    %cst_32 = arith.constant dense<0.000000e+00> : vector<8x128xf32>
    %85 = tpu.matmul %83, %84, %cst_32 {dimension_numbers = #tpu.dot_dimension_numbers<[1], [0], [0], [1], [0, 0, 1, 1], [], []>} : vector<8x32xbf16>, vector<32x128xbf16>, vector<8x128xf32> -> vector<8x128xf32>
    %86 = arith.addf %82, %85 : vector<8x128xf32>
    %87 = vector.extract_strided_slice %86 {offsets = [0, 0], sizes = [8, 96], strides = [1, 1]} : vector<8x128xf32> to vector<8x96xf32>
    %88 = arith.negf %87 : vector<8x96xf32>
    %89 = math.exp %88 : vector<8x96xf32>
    %cst_33 = arith.constant 1.000000e+00 : f32
    %90 = vector.broadcast %cst_33 : f32 to vector<8x96xf32>
    %91 = arith.addf %90, %89 : vector<8x96xf32>
    %92 = arith.divf %90, %91 : vector<8x96xf32>
    %93 = vector.extract_strided_slice %86 {offsets = [0, 96], sizes = [8, 32], strides = [1, 1]} : vector<8x128xf32> to vector<8x32xf32>
    %94 = math.tanh %93 : vector<8x32xf32>
    %95 = vector.extract_strided_slice %92 {offsets = [0, 0], sizes = [8, 32], strides = [1, 1]} : vector<8x96xf32> to vector<8x32xf32>
    %96 = vector.extract_strided_slice %92 {offsets = [0, 32], sizes = [8, 32], strides = [1, 1]} : vector<8x96xf32> to vector<8x32xf32>
    %97 = vector.extract_strided_slice %92 {offsets = [0, 64], sizes = [8, 32], strides = [1, 1]} : vector<8x96xf32> to vector<8x32xf32>
    %98 = arith.mulf %96, %50 : vector<8x32xf32>
    %99 = arith.mulf %95, %94 : vector<8x32xf32>
    %100 = arith.addf %98, %99 : vector<8x32xf32>
    %101 = math.tanh %100 : vector<8x32xf32>
    %102 = arith.mulf %97, %101 : vector<8x32xf32>
    %c1_i32 = arith.constant 1 : i32
    %103 = vector.broadcast %c1_i32 : i32 to vector<8x32xi32>
    %104 = arith.cmpi sgt, %16, %103 : vector<8x32xi32>
    %105 = arith.select %104, %102, %49 : vector<8x32xi1>, vector<8x32xf32>
    %106 = arith.select %104, %100, %50 : vector<8x32xi1>, vector<8x32xf32>
    %107 = arith.mulf %13, %102 : vector<8x32xf32>
    %108 = arith.maximumf %53, %107 : vector<8x32xf32>
    %109 = arith.select %104, %108, %53 : vector<8x32xi1>, vector<8x32xf32>
    %110 = vector.extract_strided_slice %6 {offsets = [24, 0], sizes = [8, 128], strides = [1, 1]} : vector<128x128xf32> to vector<8x128xf32>
    %111 = arith.truncf %77 : vector<8x32xf32> to vector<8x32xbf16>
    %c0_34 = arith.constant 0 : index
    %c0_35 = arith.constant 0 : index
    %112 = vector.load %arg10[%c0_34, %c0_35] : memref<32x128xbf16, #tpu.memory_space<vmem>>, vector<32x128xbf16>
    %cst_36 = arith.constant dense<0.000000e+00> : vector<8x128xf32>
    %113 = tpu.matmul %111, %112, %cst_36 {dimension_numbers = #tpu.dot_dimension_numbers<[1], [0], [0], [1], [0, 0, 1, 1], [], []>} : vector<8x32xbf16>, vector<32x128xbf16>, vector<8x128xf32> -> vector<8x128xf32>
    %114 = arith.addf %110, %113 : vector<8x128xf32>
    %115 = vector.extract_strided_slice %114 {offsets = [0, 0], sizes = [8, 96], strides = [1, 1]} : vector<8x128xf32> to vector<8x96xf32>
    %116 = arith.negf %115 : vector<8x96xf32>
    %117 = math.exp %116 : vector<8x96xf32>
    %cst_37 = arith.constant 1.000000e+00 : f32
    %118 = vector.broadcast %cst_37 : f32 to vector<8x96xf32>
    %119 = arith.addf %118, %117 : vector<8x96xf32>
    %120 = arith.divf %118, %119 : vector<8x96xf32>
    %121 = vector.extract_strided_slice %114 {offsets = [0, 96], sizes = [8, 32], strides = [1, 1]} : vector<8x128xf32> to vector<8x32xf32>
    %122 = math.tanh %121 : vector<8x32xf32>
    %123 = vector.extract_strided_slice %120 {offsets = [0, 0], sizes = [8, 32], strides = [1, 1]} : vector<8x96xf32> to vector<8x32xf32>
    %124 = vector.extract_strided_slice %120 {offsets = [0, 32], sizes = [8, 32], strides = [1, 1]} : vector<8x96xf32> to vector<8x32xf32>
    %125 = vector.extract_strided_slice %120 {offsets = [0, 64], sizes = [8, 32], strides = [1, 1]} : vector<8x96xf32> to vector<8x32xf32>
    %126 = arith.mulf %124, %78 : vector<8x32xf32>
    %127 = arith.mulf %123, %122 : vector<8x32xf32>
    %128 = arith.addf %126, %127 : vector<8x32xf32>
    %129 = math.tanh %128 : vector<8x32xf32>
    %130 = arith.mulf %125, %129 : vector<8x32xf32>
    %c1_i32_38 = arith.constant 1 : i32
    %131 = vector.broadcast %c1_i32_38 : i32 to vector<8x32xi32>
    %132 = arith.cmpi sgt, %25, %131 : vector<8x32xi32>
    %133 = arith.select %132, %130, %77 : vector<8x32xi1>, vector<8x32xf32>
    %134 = arith.select %132, %128, %78 : vector<8x32xi1>, vector<8x32xf32>
    %135 = arith.mulf %22, %130 : vector<8x32xf32>
    %136 = arith.maximumf %81, %135 : vector<8x32xf32>
    %137 = arith.select %132, %136, %81 : vector<8x32xi1>, vector<8x32xf32>
    %138 = vector.extract_strided_slice %6 {offsets = [32, 0], sizes = [8, 128], strides = [1, 1]} : vector<128x128xf32> to vector<8x128xf32>
    %139 = arith.truncf %105 : vector<8x32xf32> to vector<8x32xbf16>
    %c0_39 = arith.constant 0 : index
    %c0_40 = arith.constant 0 : index
    %140 = vector.load %arg10[%c0_39, %c0_40] : memref<32x128xbf16, #tpu.memory_space<vmem>>, vector<32x128xbf16>
    %cst_41 = arith.constant dense<0.000000e+00> : vector<8x128xf32>
    %141 = tpu.matmul %139, %140, %cst_41 {dimension_numbers = #tpu.dot_dimension_numbers<[1], [0], [0], [1], [0, 0, 1, 1], [], []>} : vector<8x32xbf16>, vector<32x128xbf16>, vector<8x128xf32> -> vector<8x128xf32>
    %142 = arith.addf %138, %141 : vector<8x128xf32>
    %143 = vector.extract_strided_slice %142 {offsets = [0, 0], sizes = [8, 96], strides = [1, 1]} : vector<8x128xf32> to vector<8x96xf32>
    %144 = arith.negf %143 : vector<8x96xf32>
    %145 = math.exp %144 : vector<8x96xf32>
    %cst_42 = arith.constant 1.000000e+00 : f32
    %146 = vector.broadcast %cst_42 : f32 to vector<8x96xf32>
    %147 = arith.addf %146, %145 : vector<8x96xf32>
    %148 = arith.divf %146, %147 : vector<8x96xf32>
    %149 = vector.extract_strided_slice %142 {offsets = [0, 96], sizes = [8, 32], strides = [1, 1]} : vector<8x128xf32> to vector<8x32xf32>
    %150 = math.tanh %149 : vector<8x32xf32>
    %151 = vector.extract_strided_slice %148 {offsets = [0, 0], sizes = [8, 32], strides = [1, 1]} : vector<8x96xf32> to vector<8x32xf32>
    %152 = vector.extract_strided_slice %148 {offsets = [0, 32], sizes = [8, 32], strides = [1, 1]} : vector<8x96xf32> to vector<8x32xf32>
    %153 = vector.extract_strided_slice %148 {offsets = [0, 64], sizes = [8, 32], strides = [1, 1]} : vector<8x96xf32> to vector<8x32xf32>
    %154 = arith.mulf %152, %106 : vector<8x32xf32>
    %155 = arith.mulf %151, %150 : vector<8x32xf32>
    %156 = arith.addf %154, %155 : vector<8x32xf32>
    %157 = math.tanh %156 : vector<8x32xf32>
    %158 = arith.mulf %153, %157 : vector<8x32xf32>
    %c2_i32 = arith.constant 2 : i32
    %159 = vector.broadcast %c2_i32 : i32 to vector<8x32xi32>
    %160 = arith.cmpi sgt, %16, %159 : vector<8x32xi32>
    %161 = arith.select %160, %158, %105 : vector<8x32xi1>, vector<8x32xf32>
    %162 = arith.select %160, %156, %106 : vector<8x32xi1>, vector<8x32xf32>
    %163 = arith.mulf %13, %158 : vector<8x32xf32>
    %164 = arith.maximumf %109, %163 : vector<8x32xf32>
    %165 = arith.select %160, %164, %109 : vector<8x32xi1>, vector<8x32xf32>
    %166 = vector.extract_strided_slice %6 {offsets = [40, 0], sizes = [8, 128], strides = [1, 1]} : vector<128x128xf32> to vector<8x128xf32>
    %167 = arith.truncf %133 : vector<8x32xf32> to vector<8x32xbf16>
    %c0_43 = arith.constant 0 : index
    %c0_44 = arith.constant 0 : index
    %168 = vector.load %arg10[%c0_43, %c0_44] : memref<32x128xbf16, #tpu.memory_space<vmem>>, vector<32x128xbf16>
    %cst_45 = arith.constant dense<0.000000e+00> : vector<8x128xf32>
    %169 = tpu.matmul %167, %168, %cst_45 {dimension_numbers = #tpu.dot_dimension_numbers<[1], [0], [0], [1], [0, 0, 1, 1], [], []>} : vector<8x32xbf16>, vector<32x128xbf16>, vector<8x128xf32> -> vector<8x128xf32>
    %170 = arith.addf %166, %169 : vector<8x128xf32>
    %171 = vector.extract_strided_slice %170 {offsets = [0, 0], sizes = [8, 96], strides = [1, 1]} : vector<8x128xf32> to vector<8x96xf32>
    %172 = arith.negf %171 : vector<8x96xf32>
    %173 = math.exp %172 : vector<8x96xf32>
    %cst_46 = arith.constant 1.000000e+00 : f32
    %174 = vector.broadcast %cst_46 : f32 to vector<8x96xf32>
    %175 = arith.addf %174, %173 : vector<8x96xf32>
    %176 = arith.divf %174, %175 : vector<8x96xf32>
    %177 = vector.extract_strided_slice %170 {offsets = [0, 96], sizes = [8, 32], strides = [1, 1]} : vector<8x128xf32> to vector<8x32xf32>
    %178 = math.tanh %177 : vector<8x32xf32>
    %179 = vector.extract_strided_slice %176 {offsets = [0, 0], sizes = [8, 32], strides = [1, 1]} : vector<8x96xf32> to vector<8x32xf32>
    %180 = vector.extract_strided_slice %176 {offsets = [0, 32], sizes = [8, 32], strides = [1, 1]} : vector<8x96xf32> to vector<8x32xf32>
    %181 = vector.extract_strided_slice %176 {offsets = [0, 64], sizes = [8, 32], strides = [1, 1]} : vector<8x96xf32> to vector<8x32xf32>
    %182 = arith.mulf %180, %134 : vector<8x32xf32>
    %183 = arith.mulf %179, %178 : vector<8x32xf32>
    %184 = arith.addf %182, %183 : vector<8x32xf32>
    %185 = math.tanh %184 : vector<8x32xf32>
    %186 = arith.mulf %181, %185 : vector<8x32xf32>
    %c2_i32_47 = arith.constant 2 : i32
    %187 = vector.broadcast %c2_i32_47 : i32 to vector<8x32xi32>
    %188 = arith.cmpi sgt, %25, %187 : vector<8x32xi32>
    %189 = arith.select %188, %186, %133 : vector<8x32xi1>, vector<8x32xf32>
    %190 = arith.select %188, %184, %134 : vector<8x32xi1>, vector<8x32xf32>
    %191 = arith.mulf %22, %186 : vector<8x32xf32>
    %192 = arith.maximumf %137, %191 : vector<8x32xf32>
    %193 = arith.select %188, %192, %137 : vector<8x32xi1>, vector<8x32xf32>
    %194 = vector.extract_strided_slice %6 {offsets = [48, 0], sizes = [8, 128], strides = [1, 1]} : vector<128x128xf32> to vector<8x128xf32>
    %195 = arith.truncf %161 : vector<8x32xf32> to vector<8x32xbf16>
    %c0_48 = arith.constant 0 : index
    %c0_49 = arith.constant 0 : index
    %196 = vector.load %arg10[%c0_48, %c0_49] : memref<32x128xbf16, #tpu.memory_space<vmem>>, vector<32x128xbf16>
    %cst_50 = arith.constant dense<0.000000e+00> : vector<8x128xf32>
    %197 = tpu.matmul %195, %196, %cst_50 {dimension_numbers = #tpu.dot_dimension_numbers<[1], [0], [0], [1], [0, 0, 1, 1], [], []>} : vector<8x32xbf16>, vector<32x128xbf16>, vector<8x128xf32> -> vector<8x128xf32>
    %198 = arith.addf %194, %197 : vector<8x128xf32>
    %199 = vector.extract_strided_slice %198 {offsets = [0, 0], sizes = [8, 96], strides = [1, 1]} : vector<8x128xf32> to vector<8x96xf32>
    %200 = arith.negf %199 : vector<8x96xf32>
    %201 = math.exp %200 : vector<8x96xf32>
    %cst_51 = arith.constant 1.000000e+00 : f32
    %202 = vector.broadcast %cst_51 : f32 to vector<8x96xf32>
    %203 = arith.addf %202, %201 : vector<8x96xf32>
    %204 = arith.divf %202, %203 : vector<8x96xf32>
    %205 = vector.extract_strided_slice %198 {offsets = [0, 96], sizes = [8, 32], strides = [1, 1]} : vector<8x128xf32> to vector<8x32xf32>
    %206 = math.tanh %205 : vector<8x32xf32>
    %207 = vector.extract_strided_slice %204 {offsets = [0, 0], sizes = [8, 32], strides = [1, 1]} : vector<8x96xf32> to vector<8x32xf32>
    %208 = vector.extract_strided_slice %204 {offsets = [0, 32], sizes = [8, 32], strides = [1, 1]} : vector<8x96xf32> to vector<8x32xf32>
    %209 = vector.extract_strided_slice %204 {offsets = [0, 64], sizes = [8, 32], strides = [1, 1]} : vector<8x96xf32> to vector<8x32xf32>
    %210 = arith.mulf %208, %162 : vector<8x32xf32>
    %211 = arith.mulf %207, %206 : vector<8x32xf32>
    %212 = arith.addf %210, %211 : vector<8x32xf32>
    %213 = math.tanh %212 : vector<8x32xf32>
    %214 = arith.mulf %209, %213 : vector<8x32xf32>
    %c3_i32 = arith.constant 3 : i32
    %215 = vector.broadcast %c3_i32 : i32 to vector<8x32xi32>
    %216 = arith.cmpi sgt, %16, %215 : vector<8x32xi32>
    %217 = arith.select %216, %214, %161 : vector<8x32xi1>, vector<8x32xf32>
    %218 = arith.select %216, %212, %162 : vector<8x32xi1>, vector<8x32xf32>
    %219 = arith.mulf %13, %214 : vector<8x32xf32>
    %220 = arith.maximumf %165, %219 : vector<8x32xf32>
    %221 = arith.select %216, %220, %165 : vector<8x32xi1>, vector<8x32xf32>
    %222 = vector.extract_strided_slice %6 {offsets = [56, 0], sizes = [8, 128], strides = [1, 1]} : vector<128x128xf32> to vector<8x128xf32>
    %223 = arith.truncf %189 : vector<8x32xf32> to vector<8x32xbf16>
    %c0_52 = arith.constant 0 : index
    %c0_53 = arith.constant 0 : index
    %224 = vector.load %arg10[%c0_52, %c0_53] : memref<32x128xbf16, #tpu.memory_space<vmem>>, vector<32x128xbf16>
    %cst_54 = arith.constant dense<0.000000e+00> : vector<8x128xf32>
    %225 = tpu.matmul %223, %224, %cst_54 {dimension_numbers = #tpu.dot_dimension_numbers<[1], [0], [0], [1], [0, 0, 1, 1], [], []>} : vector<8x32xbf16>, vector<32x128xbf16>, vector<8x128xf32> -> vector<8x128xf32>
    %226 = arith.addf %222, %225 : vector<8x128xf32>
    %227 = vector.extract_strided_slice %226 {offsets = [0, 0], sizes = [8, 96], strides = [1, 1]} : vector<8x128xf32> to vector<8x96xf32>
    %228 = arith.negf %227 : vector<8x96xf32>
    %229 = math.exp %228 : vector<8x96xf32>
    %cst_55 = arith.constant 1.000000e+00 : f32
    %230 = vector.broadcast %cst_55 : f32 to vector<8x96xf32>
    %231 = arith.addf %230, %229 : vector<8x96xf32>
    %232 = arith.divf %230, %231 : vector<8x96xf32>
    %233 = vector.extract_strided_slice %226 {offsets = [0, 96], sizes = [8, 32], strides = [1, 1]} : vector<8x128xf32> to vector<8x32xf32>
    %234 = math.tanh %233 : vector<8x32xf32>
    %235 = vector.extract_strided_slice %232 {offsets = [0, 0], sizes = [8, 32], strides = [1, 1]} : vector<8x96xf32> to vector<8x32xf32>
    %236 = vector.extract_strided_slice %232 {offsets = [0, 32], sizes = [8, 32], strides = [1, 1]} : vector<8x96xf32> to vector<8x32xf32>
    %237 = vector.extract_strided_slice %232 {offsets = [0, 64], sizes = [8, 32], strides = [1, 1]} : vector<8x96xf32> to vector<8x32xf32>
    %238 = arith.mulf %236, %190 : vector<8x32xf32>
    %239 = arith.mulf %235, %234 : vector<8x32xf32>
    %240 = arith.addf %238, %239 : vector<8x32xf32>
    %241 = math.tanh %240 : vector<8x32xf32>
    %242 = arith.mulf %237, %241 : vector<8x32xf32>
    %c3_i32_56 = arith.constant 3 : i32
    %243 = vector.broadcast %c3_i32_56 : i32 to vector<8x32xi32>
    %244 = arith.cmpi sgt, %25, %243 : vector<8x32xi32>
    %245 = arith.select %244, %242, %189 : vector<8x32xi1>, vector<8x32xf32>
    %246 = arith.select %244, %240, %190 : vector<8x32xi1>, vector<8x32xf32>
    %247 = arith.mulf %22, %242 : vector<8x32xf32>
    %248 = arith.maximumf %193, %247 : vector<8x32xf32>
    %249 = arith.select %244, %248, %193 : vector<8x32xi1>, vector<8x32xf32>
    %250 = vector.extract_strided_slice %6 {offsets = [64, 0], sizes = [8, 128], strides = [1, 1]} : vector<128x128xf32> to vector<8x128xf32>
    %251 = arith.truncf %217 : vector<8x32xf32> to vector<8x32xbf16>
    %c0_57 = arith.constant 0 : index
    %c0_58 = arith.constant 0 : index
    %252 = vector.load %arg10[%c0_57, %c0_58] : memref<32x128xbf16, #tpu.memory_space<vmem>>, vector<32x128xbf16>
    %cst_59 = arith.constant dense<0.000000e+00> : vector<8x128xf32>
    %253 = tpu.matmul %251, %252, %cst_59 {dimension_numbers = #tpu.dot_dimension_numbers<[1], [0], [0], [1], [0, 0, 1, 1], [], []>} : vector<8x32xbf16>, vector<32x128xbf16>, vector<8x128xf32> -> vector<8x128xf32>
    %254 = arith.addf %250, %253 : vector<8x128xf32>
    %255 = vector.extract_strided_slice %254 {offsets = [0, 0], sizes = [8, 96], strides = [1, 1]} : vector<8x128xf32> to vector<8x96xf32>
    %256 = arith.negf %255 : vector<8x96xf32>
    %257 = math.exp %256 : vector<8x96xf32>
    %cst_60 = arith.constant 1.000000e+00 : f32
    %258 = vector.broadcast %cst_60 : f32 to vector<8x96xf32>
    %259 = arith.addf %258, %257 : vector<8x96xf32>
    %260 = arith.divf %258, %259 : vector<8x96xf32>
    %261 = vector.extract_strided_slice %254 {offsets = [0, 96], sizes = [8, 32], strides = [1, 1]} : vector<8x128xf32> to vector<8x32xf32>
    %262 = math.tanh %261 : vector<8x32xf32>
    %263 = vector.extract_strided_slice %260 {offsets = [0, 0], sizes = [8, 32], strides = [1, 1]} : vector<8x96xf32> to vector<8x32xf32>
    %264 = vector.extract_strided_slice %260 {offsets = [0, 32], sizes = [8, 32], strides = [1, 1]} : vector<8x96xf32> to vector<8x32xf32>
    %265 = vector.extract_strided_slice %260 {offsets = [0, 64], sizes = [8, 32], strides = [1, 1]} : vector<8x96xf32> to vector<8x32xf32>
    %266 = arith.mulf %264, %218 : vector<8x32xf32>
    %267 = arith.mulf %263, %262 : vector<8x32xf32>
    %268 = arith.addf %266, %267 : vector<8x32xf32>
    %269 = math.tanh %268 : vector<8x32xf32>
    %270 = arith.mulf %265, %269 : vector<8x32xf32>
    %c4_i32 = arith.constant 4 : i32
    %271 = vector.broadcast %c4_i32 : i32 to vector<8x32xi32>
    %272 = arith.cmpi sgt, %16, %271 : vector<8x32xi32>
    %273 = arith.select %272, %270, %217 : vector<8x32xi1>, vector<8x32xf32>
    %274 = arith.select %272, %268, %218 : vector<8x32xi1>, vector<8x32xf32>
    %275 = arith.mulf %13, %270 : vector<8x32xf32>
    %276 = arith.maximumf %221, %275 : vector<8x32xf32>
    %277 = arith.select %272, %276, %221 : vector<8x32xi1>, vector<8x32xf32>
    %278 = vector.extract_strided_slice %6 {offsets = [72, 0], sizes = [8, 128], strides = [1, 1]} : vector<128x128xf32> to vector<8x128xf32>
    %279 = arith.truncf %245 : vector<8x32xf32> to vector<8x32xbf16>
    %c0_61 = arith.constant 0 : index
    %c0_62 = arith.constant 0 : index
    %280 = vector.load %arg10[%c0_61, %c0_62] : memref<32x128xbf16, #tpu.memory_space<vmem>>, vector<32x128xbf16>
    %cst_63 = arith.constant dense<0.000000e+00> : vector<8x128xf32>
    %281 = tpu.matmul %279, %280, %cst_63 {dimension_numbers = #tpu.dot_dimension_numbers<[1], [0], [0], [1], [0, 0, 1, 1], [], []>} : vector<8x32xbf16>, vector<32x128xbf16>, vector<8x128xf32> -> vector<8x128xf32>
    %282 = arith.addf %278, %281 : vector<8x128xf32>
    %283 = vector.extract_strided_slice %282 {offsets = [0, 0], sizes = [8, 96], strides = [1, 1]} : vector<8x128xf32> to vector<8x96xf32>
    %284 = arith.negf %283 : vector<8x96xf32>
    %285 = math.exp %284 : vector<8x96xf32>
    %cst_64 = arith.constant 1.000000e+00 : f32
    %286 = vector.broadcast %cst_64 : f32 to vector<8x96xf32>
    %287 = arith.addf %286, %285 : vector<8x96xf32>
    %288 = arith.divf %286, %287 : vector<8x96xf32>
    %289 = vector.extract_strided_slice %282 {offsets = [0, 96], sizes = [8, 32], strides = [1, 1]} : vector<8x128xf32> to vector<8x32xf32>
    %290 = math.tanh %289 : vector<8x32xf32>
    %291 = vector.extract_strided_slice %288 {offsets = [0, 0], sizes = [8, 32], strides = [1, 1]} : vector<8x96xf32> to vector<8x32xf32>
    %292 = vector.extract_strided_slice %288 {offsets = [0, 32], sizes = [8, 32], strides = [1, 1]} : vector<8x96xf32> to vector<8x32xf32>
    %293 = vector.extract_strided_slice %288 {offsets = [0, 64], sizes = [8, 32], strides = [1, 1]} : vector<8x96xf32> to vector<8x32xf32>
    %294 = arith.mulf %292, %246 : vector<8x32xf32>
    %295 = arith.mulf %291, %290 : vector<8x32xf32>
    %296 = arith.addf %294, %295 : vector<8x32xf32>
    %297 = math.tanh %296 : vector<8x32xf32>
    %298 = arith.mulf %293, %297 : vector<8x32xf32>
    %c4_i32_65 = arith.constant 4 : i32
    %299 = vector.broadcast %c4_i32_65 : i32 to vector<8x32xi32>
    %300 = arith.cmpi sgt, %25, %299 : vector<8x32xi32>
    %301 = arith.select %300, %298, %245 : vector<8x32xi1>, vector<8x32xf32>
    %302 = arith.select %300, %296, %246 : vector<8x32xi1>, vector<8x32xf32>
    %303 = arith.mulf %22, %298 : vector<8x32xf32>
    %304 = arith.maximumf %249, %303 : vector<8x32xf32>
    %305 = arith.select %300, %304, %249 : vector<8x32xi1>, vector<8x32xf32>
    %306 = vector.extract_strided_slice %6 {offsets = [80, 0], sizes = [8, 128], strides = [1, 1]} : vector<128x128xf32> to vector<8x128xf32>
    %307 = arith.truncf %273 : vector<8x32xf32> to vector<8x32xbf16>
    %c0_66 = arith.constant 0 : index
    %c0_67 = arith.constant 0 : index
    %308 = vector.load %arg10[%c0_66, %c0_67] : memref<32x128xbf16, #tpu.memory_space<vmem>>, vector<32x128xbf16>
    %cst_68 = arith.constant dense<0.000000e+00> : vector<8x128xf32>
    %309 = tpu.matmul %307, %308, %cst_68 {dimension_numbers = #tpu.dot_dimension_numbers<[1], [0], [0], [1], [0, 0, 1, 1], [], []>} : vector<8x32xbf16>, vector<32x128xbf16>, vector<8x128xf32> -> vector<8x128xf32>
    %310 = arith.addf %306, %309 : vector<8x128xf32>
    %311 = vector.extract_strided_slice %310 {offsets = [0, 0], sizes = [8, 96], strides = [1, 1]} : vector<8x128xf32> to vector<8x96xf32>
    %312 = arith.negf %311 : vector<8x96xf32>
    %313 = math.exp %312 : vector<8x96xf32>
    %cst_69 = arith.constant 1.000000e+00 : f32
    %314 = vector.broadcast %cst_69 : f32 to vector<8x96xf32>
    %315 = arith.addf %314, %313 : vector<8x96xf32>
    %316 = arith.divf %314, %315 : vector<8x96xf32>
    %317 = vector.extract_strided_slice %310 {offsets = [0, 96], sizes = [8, 32], strides = [1, 1]} : vector<8x128xf32> to vector<8x32xf32>
    %318 = math.tanh %317 : vector<8x32xf32>
    %319 = vector.extract_strided_slice %316 {offsets = [0, 0], sizes = [8, 32], strides = [1, 1]} : vector<8x96xf32> to vector<8x32xf32>
    %320 = vector.extract_strided_slice %316 {offsets = [0, 32], sizes = [8, 32], strides = [1, 1]} : vector<8x96xf32> to vector<8x32xf32>
    %321 = vector.extract_strided_slice %316 {offsets = [0, 64], sizes = [8, 32], strides = [1, 1]} : vector<8x96xf32> to vector<8x32xf32>
    %322 = arith.mulf %320, %274 : vector<8x32xf32>
    %323 = arith.mulf %319, %318 : vector<8x32xf32>
    %324 = arith.addf %322, %323 : vector<8x32xf32>
    %325 = math.tanh %324 : vector<8x32xf32>
    %326 = arith.mulf %321, %325 : vector<8x32xf32>
    %c5_i32 = arith.constant 5 : i32
    %327 = vector.broadcast %c5_i32 : i32 to vector<8x32xi32>
    %328 = arith.cmpi sgt, %16, %327 : vector<8x32xi32>
    %329 = arith.select %328, %326, %273 : vector<8x32xi1>, vector<8x32xf32>
    %330 = arith.select %328, %324, %274 : vector<8x32xi1>, vector<8x32xf32>
    %331 = arith.mulf %13, %326 : vector<8x32xf32>
    %332 = arith.maximumf %277, %331 : vector<8x32xf32>
    %333 = arith.select %328, %332, %277 : vector<8x32xi1>, vector<8x32xf32>
    %334 = vector.extract_strided_slice %6 {offsets = [88, 0], sizes = [8, 128], strides = [1, 1]} : vector<128x128xf32> to vector<8x128xf32>
    %335 = arith.truncf %301 : vector<8x32xf32> to vector<8x32xbf16>
    %c0_70 = arith.constant 0 : index
    %c0_71 = arith.constant 0 : index
    %336 = vector.load %arg10[%c0_70, %c0_71] : memref<32x128xbf16, #tpu.memory_space<vmem>>, vector<32x128xbf16>
    %cst_72 = arith.constant dense<0.000000e+00> : vector<8x128xf32>
    %337 = tpu.matmul %335, %336, %cst_72 {dimension_numbers = #tpu.dot_dimension_numbers<[1], [0], [0], [1], [0, 0, 1, 1], [], []>} : vector<8x32xbf16>, vector<32x128xbf16>, vector<8x128xf32> -> vector<8x128xf32>
    %338 = arith.addf %334, %337 : vector<8x128xf32>
    %339 = vector.extract_strided_slice %338 {offsets = [0, 0], sizes = [8, 96], strides = [1, 1]} : vector<8x128xf32> to vector<8x96xf32>
    %340 = arith.negf %339 : vector<8x96xf32>
    %341 = math.exp %340 : vector<8x96xf32>
    %cst_73 = arith.constant 1.000000e+00 : f32
    %342 = vector.broadcast %cst_73 : f32 to vector<8x96xf32>
    %343 = arith.addf %342, %341 : vector<8x96xf32>
    %344 = arith.divf %342, %343 : vector<8x96xf32>
    %345 = vector.extract_strided_slice %338 {offsets = [0, 96], sizes = [8, 32], strides = [1, 1]} : vector<8x128xf32> to vector<8x32xf32>
    %346 = math.tanh %345 : vector<8x32xf32>
    %347 = vector.extract_strided_slice %344 {offsets = [0, 0], sizes = [8, 32], strides = [1, 1]} : vector<8x96xf32> to vector<8x32xf32>
    %348 = vector.extract_strided_slice %344 {offsets = [0, 32], sizes = [8, 32], strides = [1, 1]} : vector<8x96xf32> to vector<8x32xf32>
    %349 = vector.extract_strided_slice %344 {offsets = [0, 64], sizes = [8, 32], strides = [1, 1]} : vector<8x96xf32> to vector<8x32xf32>
    %350 = arith.mulf %348, %302 : vector<8x32xf32>
    %351 = arith.mulf %347, %346 : vector<8x32xf32>
    %352 = arith.addf %350, %351 : vector<8x32xf32>
    %353 = math.tanh %352 : vector<8x32xf32>
    %354 = arith.mulf %349, %353 : vector<8x32xf32>
    %c5_i32_74 = arith.constant 5 : i32
    %355 = vector.broadcast %c5_i32_74 : i32 to vector<8x32xi32>
    %356 = arith.cmpi sgt, %25, %355 : vector<8x32xi32>
    %357 = arith.select %356, %354, %301 : vector<8x32xi1>, vector<8x32xf32>
    %358 = arith.select %356, %352, %302 : vector<8x32xi1>, vector<8x32xf32>
    %359 = arith.mulf %22, %354 : vector<8x32xf32>
    %360 = arith.maximumf %305, %359 : vector<8x32xf32>
    %361 = arith.select %356, %360, %305 : vector<8x32xi1>, vector<8x32xf32>
    %362 = vector.extract_strided_slice %6 {offsets = [96, 0], sizes = [8, 128], strides = [1, 1]} : vector<128x128xf32> to vector<8x128xf32>
    %363 = arith.truncf %329 : vector<8x32xf32> to vector<8x32xbf16>
    %c0_75 = arith.constant 0 : index
    %c0_76 = arith.constant 0 : index
    %364 = vector.load %arg10[%c0_75, %c0_76] : memref<32x128xbf16, #tpu.memory_space<vmem>>, vector<32x128xbf16>
    %cst_77 = arith.constant dense<0.000000e+00> : vector<8x128xf32>
    %365 = tpu.matmul %363, %364, %cst_77 {dimension_numbers = #tpu.dot_dimension_numbers<[1], [0], [0], [1], [0, 0, 1, 1], [], []>} : vector<8x32xbf16>, vector<32x128xbf16>, vector<8x128xf32> -> vector<8x128xf32>
    %366 = arith.addf %362, %365 : vector<8x128xf32>
    %367 = vector.extract_strided_slice %366 {offsets = [0, 0], sizes = [8, 96], strides = [1, 1]} : vector<8x128xf32> to vector<8x96xf32>
    %368 = arith.negf %367 : vector<8x96xf32>
    %369 = math.exp %368 : vector<8x96xf32>
    %cst_78 = arith.constant 1.000000e+00 : f32
    %370 = vector.broadcast %cst_78 : f32 to vector<8x96xf32>
    %371 = arith.addf %370, %369 : vector<8x96xf32>
    %372 = arith.divf %370, %371 : vector<8x96xf32>
    %373 = vector.extract_strided_slice %366 {offsets = [0, 96], sizes = [8, 32], strides = [1, 1]} : vector<8x128xf32> to vector<8x32xf32>
    %374 = math.tanh %373 : vector<8x32xf32>
    %375 = vector.extract_strided_slice %372 {offsets = [0, 0], sizes = [8, 32], strides = [1, 1]} : vector<8x96xf32> to vector<8x32xf32>
    %376 = vector.extract_strided_slice %372 {offsets = [0, 32], sizes = [8, 32], strides = [1, 1]} : vector<8x96xf32> to vector<8x32xf32>
    %377 = vector.extract_strided_slice %372 {offsets = [0, 64], sizes = [8, 32], strides = [1, 1]} : vector<8x96xf32> to vector<8x32xf32>
    %378 = arith.mulf %376, %330 : vector<8x32xf32>
    %379 = arith.mulf %375, %374 : vector<8x32xf32>
    %380 = arith.addf %378, %379 : vector<8x32xf32>
    %381 = math.tanh %380 : vector<8x32xf32>
    %382 = arith.mulf %377, %381 : vector<8x32xf32>
    %c6_i32 = arith.constant 6 : i32
    %383 = vector.broadcast %c6_i32 : i32 to vector<8x32xi32>
    %384 = arith.cmpi sgt, %16, %383 : vector<8x32xi32>
    %385 = arith.select %384, %382, %329 : vector<8x32xi1>, vector<8x32xf32>
    %386 = arith.select %384, %380, %330 : vector<8x32xi1>, vector<8x32xf32>
    %387 = arith.mulf %13, %382 : vector<8x32xf32>
    %388 = arith.maximumf %333, %387 : vector<8x32xf32>
    %389 = arith.select %384, %388, %333 : vector<8x32xi1>, vector<8x32xf32>
    %390 = vector.extract_strided_slice %6 {offsets = [104, 0], sizes = [8, 128], strides = [1, 1]} : vector<128x128xf32> to vector<8x128xf32>
    %391 = arith.truncf %357 : vector<8x32xf32> to vector<8x32xbf16>
    %c0_79 = arith.constant 0 : index
    %c0_80 = arith.constant 0 : index
    %392 = vector.load %arg10[%c0_79, %c0_80] : memref<32x128xbf16, #tpu.memory_space<vmem>>, vector<32x128xbf16>
    %cst_81 = arith.constant dense<0.000000e+00> : vector<8x128xf32>
    %393 = tpu.matmul %391, %392, %cst_81 {dimension_numbers = #tpu.dot_dimension_numbers<[1], [0], [0], [1], [0, 0, 1, 1], [], []>} : vector<8x32xbf16>, vector<32x128xbf16>, vector<8x128xf32> -> vector<8x128xf32>
    %394 = arith.addf %390, %393 : vector<8x128xf32>
    %395 = vector.extract_strided_slice %394 {offsets = [0, 0], sizes = [8, 96], strides = [1, 1]} : vector<8x128xf32> to vector<8x96xf32>
    %396 = arith.negf %395 : vector<8x96xf32>
    %397 = math.exp %396 : vector<8x96xf32>
    %cst_82 = arith.constant 1.000000e+00 : f32
    %398 = vector.broadcast %cst_82 : f32 to vector<8x96xf32>
    %399 = arith.addf %398, %397 : vector<8x96xf32>
    %400 = arith.divf %398, %399 : vector<8x96xf32>
    %401 = vector.extract_strided_slice %394 {offsets = [0, 96], sizes = [8, 32], strides = [1, 1]} : vector<8x128xf32> to vector<8x32xf32>
    %402 = math.tanh %401 : vector<8x32xf32>
    %403 = vector.extract_strided_slice %400 {offsets = [0, 0], sizes = [8, 32], strides = [1, 1]} : vector<8x96xf32> to vector<8x32xf32>
    %404 = vector.extract_strided_slice %400 {offsets = [0, 32], sizes = [8, 32], strides = [1, 1]} : vector<8x96xf32> to vector<8x32xf32>
    %405 = vector.extract_strided_slice %400 {offsets = [0, 64], sizes = [8, 32], strides = [1, 1]} : vector<8x96xf32> to vector<8x32xf32>
    %406 = arith.mulf %404, %358 : vector<8x32xf32>
    %407 = arith.mulf %403, %402 : vector<8x32xf32>
    %408 = arith.addf %406, %407 : vector<8x32xf32>
    %409 = math.tanh %408 : vector<8x32xf32>
    %410 = arith.mulf %405, %409 : vector<8x32xf32>
    %c6_i32_83 = arith.constant 6 : i32
    %411 = vector.broadcast %c6_i32_83 : i32 to vector<8x32xi32>
    %412 = arith.cmpi sgt, %25, %411 : vector<8x32xi32>
    %413 = arith.select %412, %410, %357 : vector<8x32xi1>, vector<8x32xf32>
    %414 = arith.select %412, %408, %358 : vector<8x32xi1>, vector<8x32xf32>
    %415 = arith.mulf %22, %410 : vector<8x32xf32>
    %416 = arith.maximumf %361, %415 : vector<8x32xf32>
    %417 = arith.select %412, %416, %361 : vector<8x32xi1>, vector<8x32xf32>
    %418 = vector.extract_strided_slice %6 {offsets = [112, 0], sizes = [8, 128], strides = [1, 1]} : vector<128x128xf32> to vector<8x128xf32>
    %419 = arith.truncf %385 : vector<8x32xf32> to vector<8x32xbf16>
    %c0_84 = arith.constant 0 : index
    %c0_85 = arith.constant 0 : index
    %420 = vector.load %arg10[%c0_84, %c0_85] : memref<32x128xbf16, #tpu.memory_space<vmem>>, vector<32x128xbf16>
    %cst_86 = arith.constant dense<0.000000e+00> : vector<8x128xf32>
    %421 = tpu.matmul %419, %420, %cst_86 {dimension_numbers = #tpu.dot_dimension_numbers<[1], [0], [0], [1], [0, 0, 1, 1], [], []>} : vector<8x32xbf16>, vector<32x128xbf16>, vector<8x128xf32> -> vector<8x128xf32>
    %422 = arith.addf %418, %421 : vector<8x128xf32>
    %423 = vector.extract_strided_slice %422 {offsets = [0, 0], sizes = [8, 96], strides = [1, 1]} : vector<8x128xf32> to vector<8x96xf32>
    %424 = arith.negf %423 : vector<8x96xf32>
    %425 = math.exp %424 : vector<8x96xf32>
    %cst_87 = arith.constant 1.000000e+00 : f32
    %426 = vector.broadcast %cst_87 : f32 to vector<8x96xf32>
    %427 = arith.addf %426, %425 : vector<8x96xf32>
    %428 = arith.divf %426, %427 : vector<8x96xf32>
    %429 = vector.extract_strided_slice %422 {offsets = [0, 96], sizes = [8, 32], strides = [1, 1]} : vector<8x128xf32> to vector<8x32xf32>
    %430 = math.tanh %429 : vector<8x32xf32>
    %431 = vector.extract_strided_slice %428 {offsets = [0, 0], sizes = [8, 32], strides = [1, 1]} : vector<8x96xf32> to vector<8x32xf32>
    %432 = vector.extract_strided_slice %428 {offsets = [0, 32], sizes = [8, 32], strides = [1, 1]} : vector<8x96xf32> to vector<8x32xf32>
    %433 = vector.extract_strided_slice %428 {offsets = [0, 64], sizes = [8, 32], strides = [1, 1]} : vector<8x96xf32> to vector<8x32xf32>
    %434 = arith.mulf %432, %386 : vector<8x32xf32>
    %435 = arith.mulf %431, %430 : vector<8x32xf32>
    %436 = arith.addf %434, %435 : vector<8x32xf32>
    %437 = math.tanh %436 : vector<8x32xf32>
    %438 = arith.mulf %433, %437 : vector<8x32xf32>
    %c7_i32 = arith.constant 7 : i32
    %439 = vector.broadcast %c7_i32 : i32 to vector<8x32xi32>
    %440 = arith.cmpi sgt, %16, %439 : vector<8x32xi32>
    %441 = arith.mulf %13, %438 : vector<8x32xf32>
    %442 = arith.maximumf %389, %441 : vector<8x32xf32>
    %443 = arith.select %440, %442, %389 : vector<8x32xi1>, vector<8x32xf32>
    %444 = vector.extract_strided_slice %6 {offsets = [120, 0], sizes = [8, 128], strides = [1, 1]} : vector<128x128xf32> to vector<8x128xf32>
    %445 = arith.truncf %413 : vector<8x32xf32> to vector<8x32xbf16>
    %c0_88 = arith.constant 0 : index
    %c0_89 = arith.constant 0 : index
    %446 = vector.load %arg10[%c0_88, %c0_89] : memref<32x128xbf16, #tpu.memory_space<vmem>>, vector<32x128xbf16>
    %cst_90 = arith.constant dense<0.000000e+00> : vector<8x128xf32>
    %447 = tpu.matmul %445, %446, %cst_90 {dimension_numbers = #tpu.dot_dimension_numbers<[1], [0], [0], [1], [0, 0, 1, 1], [], []>} : vector<8x32xbf16>, vector<32x128xbf16>, vector<8x128xf32> -> vector<8x128xf32>
    %448 = arith.addf %444, %447 : vector<8x128xf32>
    %449 = vector.extract_strided_slice %448 {offsets = [0, 0], sizes = [8, 96], strides = [1, 1]} : vector<8x128xf32> to vector<8x96xf32>
    %450 = arith.negf %449 : vector<8x96xf32>
    %451 = math.exp %450 : vector<8x96xf32>
    %cst_91 = arith.constant 1.000000e+00 : f32
    %452 = vector.broadcast %cst_91 : f32 to vector<8x96xf32>
    %453 = arith.addf %452, %451 : vector<8x96xf32>
    %454 = arith.divf %452, %453 : vector<8x96xf32>
    %455 = vector.extract_strided_slice %448 {offsets = [0, 96], sizes = [8, 32], strides = [1, 1]} : vector<8x128xf32> to vector<8x32xf32>
    %456 = math.tanh %455 : vector<8x32xf32>
    %457 = vector.extract_strided_slice %454 {offsets = [0, 0], sizes = [8, 32], strides = [1, 1]} : vector<8x96xf32> to vector<8x32xf32>
    %458 = vector.extract_strided_slice %454 {offsets = [0, 32], sizes = [8, 32], strides = [1, 1]} : vector<8x96xf32> to vector<8x32xf32>
    %459 = vector.extract_strided_slice %454 {offsets = [0, 64], sizes = [8, 32], strides = [1, 1]} : vector<8x96xf32> to vector<8x32xf32>
    %460 = arith.mulf %458, %414 : vector<8x32xf32>
    %461 = arith.mulf %457, %456 : vector<8x32xf32>
    %462 = arith.addf %460, %461 : vector<8x32xf32>
    %463 = math.tanh %462 : vector<8x32xf32>
    %464 = arith.mulf %459, %463 : vector<8x32xf32>
    %c7_i32_92 = arith.constant 7 : i32
    %465 = vector.broadcast %c7_i32_92 : i32 to vector<8x32xi32>
    %466 = arith.cmpi sgt, %25, %465 : vector<8x32xi32>
    %467 = arith.mulf %22, %464 : vector<8x32xf32>
    %468 = arith.maximumf %417, %467 : vector<8x32xf32>
    %469 = arith.select %466, %468, %417 : vector<8x32xi1>, vector<8x32xf32>
    %470 = vector.broadcast %7 : i32 to vector<8x1xi32>
    %471 = arith.cmpi slt, %14, %470 : vector<8x1xi32>
    %cst_93 = arith.constant 0.000000e+00 : f32
    %472 = vector.broadcast %cst_93 : f32 to vector<8x32xf32>
    %473 = arith.maximumf %443, %472 : vector<8x32xf32>
    %474 = vector.shape_cast %471 : vector<8x1xi1> to vector<8x1xi1>
    %475 = vector.broadcast %474 : vector<8x1xi1> to vector<8x32xi1>
    %476 = arith.select %475, %473, %443 : vector<8x32xi1>, vector<8x32xf32>
    %c0_i32_94 = arith.constant 0 : i32
    %477 = vector.broadcast %c0_i32_94 : i32 to vector<8x1xi32>
    %478 = arith.cmpi sgt, %14, %477 : vector<8x1xi32>
    %cst_95 = arith.constant 0.000000e+00 : f32
    %479 = vector.shape_cast %478 : vector<8x1xi1> to vector<8x1xi1>
    %480 = vector.broadcast %479 : vector<8x1xi1> to vector<8x32xi1>
    %481 = vector.broadcast %cst_95 : f32 to vector<8x32xf32>
    %482 = arith.select %480, %476, %481 : vector<8x32xi1>, vector<8x32xf32>
    %483 = vector.broadcast %7 : i32 to vector<8x1xi32>
    %484 = arith.cmpi slt, %23, %483 : vector<8x1xi32>
    %cst_96 = arith.constant 0.000000e+00 : f32
    %485 = vector.broadcast %cst_96 : f32 to vector<8x32xf32>
    %486 = arith.maximumf %469, %485 : vector<8x32xf32>
    %487 = vector.shape_cast %484 : vector<8x1xi1> to vector<8x1xi1>
    %488 = vector.broadcast %487 : vector<8x1xi1> to vector<8x32xi1>
    %489 = arith.select %488, %486, %469 : vector<8x32xi1>, vector<8x32xf32>
    %c0_i32_97 = arith.constant 0 : i32
    %490 = vector.broadcast %c0_i32_97 : i32 to vector<8x1xi32>
    %491 = arith.cmpi sgt, %23, %490 : vector<8x1xi32>
    %cst_98 = arith.constant 0.000000e+00 : f32
    %492 = vector.shape_cast %491 : vector<8x1xi1> to vector<8x1xi1>
    %493 = vector.broadcast %492 : vector<8x1xi1> to vector<8x32xi1>
    %494 = vector.broadcast %cst_98 : f32 to vector<8x32xf32>
    %495 = arith.select %493, %489, %494 : vector<8x32xi1>, vector<8x32xf32>
    %496 = tpu.concatenate %482, %495 in 0 : vector<8x32xf32>, vector<8x32xf32> -> vector<16x32xf32>
    %c0_99 = arith.constant 0 : index
    %c0_100 = arith.constant 0 : index
    %497 = vector.load %arg1[%c0_99, %c0_100] : memref<16x32xbf16, #tpu.memory_space<vmem>>, vector<16x32xbf16>
    %c0_101 = arith.constant 0 : index
    %c0_102 = arith.constant 0 : index
    %498 = vector.load %arg2[%c0_101, %c0_102] : memref<16x32xbf16, #tpu.memory_space<vmem>>, vector<16x32xbf16>
    %c0_103 = arith.constant 0 : index
    %c0_104 = arith.constant 0 : index
    %499 = vector.load %arg3[%c0_103, %c0_104] : memref<16x32xbf16, #tpu.memory_space<vmem>>, vector<16x32xbf16>
    %500 = arith.truncf %496 : vector<16x32xf32> to vector<16x32xbf16>
    %501 = tpu.concatenate %497, %500, %498, %499 in 1 : vector<16x32xbf16>, vector<16x32xbf16>, vector<16x32xbf16>, vector<16x32xbf16> -> vector<16x128xbf16>
    %c0_105 = arith.constant 0 : index
    %c0_106 = arith.constant 0 : index
    %502 = vector.load %arg12[%c0_105, %c0_106] : memref<128x128xbf16, #tpu.memory_space<vmem>>, vector<128x128xbf16>
    %cst_107 = arith.constant dense<0.000000e+00> : vector<16x128xf32>
    %503 = tpu.matmul %501, %502, %cst_107 {dimension_numbers = #tpu.dot_dimension_numbers<[1], [0], [0], [1], [0, 0, 1, 1], [], []>} : vector<16x128xbf16>, vector<128x128xbf16>, vector<16x128xf32> -> vector<16x128xf32>
    %504 = arith.extf %498 : vector<16x32xbf16> to vector<16x32xf32>
    %505 = vector.extract_strided_slice %503 {offsets = [0, 0], sizes = [16, 32], strides = [1, 1]} : vector<16x128xf32> to vector<16x32xf32>
    %506 = arith.mulf %505, %504 : vector<16x32xf32>
    %cst_108 = arith.constant dense<0.000000e+00> : vector<16xf32>
    %507 = vector.multi_reduction <add>, %506, %cst_108 [1] : vector<16x32xf32> to vector<16xf32>
    %508 = vector.shape_cast %507 : vector<16xf32> to vector<16x1xf32>
    %509 = vector.extract_strided_slice %503 {offsets = [0, 32], sizes = [16, 32], strides = [1, 1]} : vector<16x128xf32> to vector<16x32xf32>
    %510 = arith.mulf %509, %504 : vector<16x32xf32>
    %cst_109 = arith.constant dense<0.000000e+00> : vector<16xf32>
    %511 = vector.multi_reduction <add>, %510, %cst_109 [1] : vector<16x32xf32> to vector<16xf32>
    %512 = vector.shape_cast %511 : vector<16xf32> to vector<16x1xf32>
    %513 = vector.extract_strided_slice %503 {offsets = [0, 64], sizes = [16, 32], strides = [1, 1]} : vector<16x128xf32> to vector<16x32xf32>
    %514 = arith.mulf %513, %504 : vector<16x32xf32>
    %cst_110 = arith.constant dense<0.000000e+00> : vector<16xf32>
    %515 = vector.multi_reduction <add>, %514, %cst_110 [1] : vector<16x32xf32> to vector<16xf32>
    %516 = vector.shape_cast %515 : vector<16xf32> to vector<16x1xf32>
    %517 = vector.extract_strided_slice %503 {offsets = [0, 96], sizes = [16, 32], strides = [1, 1]} : vector<16x128xf32> to vector<16x32xf32>
    %518 = arith.mulf %517, %504 : vector<16x32xf32>
    %cst_111 = arith.constant dense<0.000000e+00> : vector<16xf32>
    %519 = vector.multi_reduction <add>, %518, %cst_111 [1] : vector<16x32xf32> to vector<16xf32>
    %520 = vector.shape_cast %519 : vector<16xf32> to vector<16x1xf32>
    %521 = tpu.concatenate %508, %512, %516, %520 in 1 : vector<16x1xf32>, vector<16x1xf32>, vector<16x1xf32>, vector<16x1xf32> -> vector<16x4xf32>
    %c0_112 = arith.constant 0 : index
    %c0_113 = arith.constant 0 : index
    %522 = vector.load %arg13[%c0_112, %c0_113] : memref<128x4xbf16, #tpu.memory_space<vmem>>, vector<128x4xbf16>
    %cst_114 = arith.constant dense<0.000000e+00> : vector<16x4xf32>
    %523 = tpu.matmul %501, %522, %cst_114 {dimension_numbers = #tpu.dot_dimension_numbers<[1], [0], [0], [1], [0, 0, 1, 1], [], []>} : vector<16x128xbf16>, vector<128x4xbf16>, vector<16x4xf32> -> vector<16x4xf32>
    %524 = arith.addf %521, %523 : vector<16x4xf32>
    %c0_115 = arith.constant 0 : index
    %c0_116 = arith.constant 0 : index
    %525 = vector.load %arg14[%c0_115, %c0_116] : memref<1x4xf32, #tpu.memory_space<vmem>>, vector<1x4xf32>
    %526 = vector.broadcast %525 : vector<1x4xf32> to vector<16x4xf32>
    %527 = arith.addf %524, %526 : vector<16x4xf32>
    %528 = math.tanh %527 : vector<16x4xf32>
    %c0_117 = arith.constant 0 : index
    %c0_118 = arith.constant 0 : index
    %529 = vector.load %arg15[%c0_117, %c0_118] : memref<1x4xf32, #tpu.memory_space<vmem>>, vector<1x4xf32>
    %530 = vector.broadcast %529 : vector<1x4xf32> to vector<16x4xf32>
    %531 = arith.mulf %528, %530 : vector<16x4xf32>
    %cst_119 = arith.constant dense<0.000000e+00> : vector<16xf32>
    %532 = vector.multi_reduction <add>, %531, %cst_119 [1] : vector<16x4xf32> to vector<16xf32>
    %533 = vector.shape_cast %532 : vector<16xf32> to vector<16x1xf32>
    %c0_120 = arith.constant 0 : index
    %c0_121 = arith.constant 0 : index
    %534 = vector.load %arg16[%c0_120, %c0_121] : memref<16x1xf32, #tpu.memory_space<vmem>>, vector<16x1xf32>
    tpu.vector_store %arg16[%c0_120, %c0_121], %533 {strides = array<i32>} : memref<16x1xf32, #tpu.memory_space<vmem>>, vector<16x1xf32>,
    return
  }
  func.func @transform_0(%arg0: i32) -> (i32, i32) {
    %c0_i32 = arith.constant 0 : i32
    %c0_i32_0 = arith.constant 0 : i32
    return %arg0, %c0_i32 : i32, i32
  }
  func.func @transform_1(%arg0: i32) -> (i32, i32) {
    %c0_i32 = arith.constant 0 : i32
    %c0_i32_0 = arith.constant 0 : i32
    return %arg0, %c0_i32 : i32, i32
  }
  func.func @transform_2(%arg0: i32) -> (i32, i32) {
    %c0_i32 = arith.constant 0 : i32
    %c0_i32_0 = arith.constant 0 : i32
    return %arg0, %c0_i32 : i32, i32
  }
  func.func @transform_3(%arg0: i32) -> (i32, i32) {
    %c0_i32 = arith.constant 0 : i32
    %c0_i32_0 = arith.constant 0 : i32
    return %arg0, %c0_i32 : i32, i32
  }
  func.func @transform_4(%arg0: i32) -> (i32, i32) {
    %c0_i32 = arith.constant 0 : i32
    %c0_i32_0 = arith.constant 0 : i32
    return %arg0, %c0_i32 : i32, i32
  }
  func.func @transform_5(%arg0: i32) -> i32 {
    %c0_i32 = arith.constant 0 : i32
    %c0_i32_0 = arith.constant 0 : i32
    return %c0_i32 : i32
  }
  func.func @transform_6(%arg0: i32) -> (i32, i32) {
    %c0_i32 = arith.constant 0 : i32
    %c0_i32_0 = arith.constant 0 : i32
    return %arg0, %c0_i32 : i32, i32
  }
  func.func @transform_7(%arg0: i32) -> (i32, i32) {
    %c0_i32 = arith.constant 0 : i32
    %c0_i32_0 = arith.constant 0 : i32
    return %arg0, %c0_i32 : i32, i32
  }
  func.func @transform_8(%arg0: i32) -> (i32, i32) {
    %c0_i32 = arith.constant 0 : i32
    %c0_i32_0 = arith.constant 0 : i32
    %c0_i32_1 = arith.constant 0 : i32
    return %c0_i32, %c0_i32_0 : i32, i32
  }
  func.func @transform_9(%arg0: i32) -> (i32, i32) {
    %c0_i32 = arith.constant 0 : i32
    %c0_i32_0 = arith.constant 0 : i32
    %c0_i32_1 = arith.constant 0 : i32
    return %c0_i32, %c0_i32_0 : i32, i32
  }
  func.func @transform_10(%arg0: i32) -> (i32, i32) {
    %c0_i32 = arith.constant 0 : i32
    %c0_i32_0 = arith.constant 0 : i32
    %c0_i32_1 = arith.constant 0 : i32
    return %c0_i32, %c0_i32_0 : i32, i32
  }
  func.func @transform_11(%arg0: i32) -> (i32, i32) {
    %c0_i32 = arith.constant 0 : i32
    %c0_i32_0 = arith.constant 0 : i32
    %c0_i32_1 = arith.constant 0 : i32
    return %c0_i32, %c0_i32_0 : i32, i32
  }
  func.func @transform_12(%arg0: i32) -> (i32, i32) {
    %c0_i32 = arith.constant 0 : i32
    %c0_i32_0 = arith.constant 0 : i32
    %c0_i32_1 = arith.constant 0 : i32
    return %c0_i32, %c0_i32_0 : i32, i32
  }
  func.func @transform_13(%arg0: i32) -> (i32, i32) {
    %c0_i32 = arith.constant 0 : i32
    %c0_i32_0 = arith.constant 0 : i32
    %c0_i32_1 = arith.constant 0 : i32
    return %c0_i32, %c0_i32_0 : i32, i32
  }
  func.func @transform_14(%arg0: i32) -> (i32, i32) {
    %c0_i32 = arith.constant 0 : i32
    %c0_i32_0 = arith.constant 0 : i32
    %c0_i32_1 = arith.constant 0 : i32
    return %c0_i32, %c0_i32_0 : i32, i32
  }
  func.func @transform_15(%arg0: i32) -> (i32, i32) {
    %c0_i32 = arith.constant 0 : i32
    %c0_i32_0 = arith.constant 0 : i32
    return %arg0, %c0_i32 : i32, i32
  }
}

</mosaic_0001>

<bundles_post_ra>
// kernel: expan_tmatch_forward.1
= control target key start
LH: loop header
LB: loop body
LE: loop exit
PB: predicated region body
PF: predicated region fallthrough
CT: control target
= control target key end

     0   :  { %s3353_s20 = smov 0   ;;  %s4183_s0 = inlined_call_operand.vmem [shape: bf16[32,32], index: 0, kind: input, shape index: {}]   ;;  %s4184_s1 = inlined_call_operand.vmem [shape: bf16[32,32], index: 1, kind: input, shape index: {}]   ;;  %s4185_s2 = inlined_call_operand.vmem [shape: bf16[32,32], index: 2, kind: input, shape index: {}]   ;;  %s4186_s3 = inlined_call_operand.vmem [shape: bf16[256,32], index: 3, kind: input, shape index: {}]   ;;  %s4187_s4 = inlined_call_operand.vmem [shape: s32[32,1], index: 4, kind: input, shape index: {}]   ;;  %s4188_s5 = inlined_call_operand.<no memory space> [shape: s32[1], index: 5, kind: input, shape index: {}]   ;;  %s4189_s6 = inlined_call_operand.vmem [shape: f32[32,32], index: 6, kind: input, shape index: {}]   ;;  %s4190_s7 = inlined_call_operand.vmem [shape: f32[32,32], index: 7, kind: input, shape index: {}]   ;;  %s4191_s8 = inlined_call_operand.vmem [shape: bf16[32,160], index: 8, kind: input, shape index: {}]   ;;  %s4192_s9 = inlined_call_operand.vmem [shape: bf16[32,128], index: 9, kind: input, shape index: {}]   ;;  %s4193_s10 = inlined_call_operand.vmem [shape: f32[1,160], index: 10, kind: input, shape index: {}]   ;;  %s4194_s11 = inlined_call_operand.vmem [shape: bf16[128,128], index: 11, kind: input, shape index: {}]   ;;  %s4195_s12 = inlined_call_operand.vmem [shape: bf16[128,4], index: 12, kind: input, shape index: {}]   ;;  %s4196_s13 = inlined_call_operand.vmem [shape: f32[1,4], index: 13, kind: input, shape index: {}]   ;;  %s4197_s14 = inlined_call_operand.vmem [shape: f32[1,4], index: 14, kind: input, shape index: {}]   ;;  %s4198_s15 = inlined_call_operand.vmem [shape: f32[32,1], index: 15, kind: output, shape index: {}]  }
   0x1   :  { %20 = sst [smem:[#allocation2]] %s4188_s5 }
   0x2 LB: > { %s2721_s21 = sadd.s32 4294967295, %s3262_s20   ;;  %p2725_p0 = scmp.ge.s32.totalorder %s3262_s20, 1  ;;  %s3262_s20 = sphi %s3353_s20, %s26_s20  }
   0x3   : > { %p505_p1 = scmp.lt.s32.totalorder %s3262_s20, 3 }
   0x5   : > { %p506_p2 = pnand %p2725_p0, %p505_p1 }
   0x6   : > { %v3084_v0 = vld [vmem:[%s4191_s8 + $0x4] ss:$8 sps:$4 sm:$0xff] (!%p506_p2)   ;;  %v3264_v1 = vmov (!%p506_p2), 0.0   ;;  %vm3265_vm0 = vmmov (!%p506_p2), 0   ;;  %v3087_v3 = vld [vmem:[%s4191_s8] ss:$8 sps:$4 sm:$0xff] (!%p506_p2)   ;;  %v654_v14 = vlaneseq (!%p506_p2) }
   0x7   : > { %509 = sbr.rel (%p506_p2) target bundleno = 6464 (0x1940), region = 80  ;;  %2885 = vmatprep.subr.bf16.mxu1 (!%p506_p2), %v3264_v1  ;;  %v3368_v2 = vld [vmem:[%s4192_s9] sm:$0xff] (!%p506_p2)   ;;  %2889 = vmatprep.mubr.msk.bf16.mxu1 (!%p506_p2), %vm3265_vm0, %v3264_v1  ;;  %v3266_v4 = vmov (!%p506_p2), 0   ;;  %s2726_s27 = sshll.u32 (!%p506_p2), %s2721_s21, 1  ;;  %v3088_v5 = vld [vmem:[%s4191_s8 + $0x14] ss:$8 sps:$4 sm:$0xff] (!%p506_p2)  }
   0x8   : > { %749 = vmatprep.subr.bf16.mxu0 (!%p506_p2), %v3084_v0  ;;  %781 = vmatprep.mubr.bf16.mxu0 (!%p506_p2), %v3266_v4  ;;  %v3385_v6 = vld [vmem:[%s4192_s9 + $0x8] sm:$0xff] (!%p506_p2)   ;;  %v3091_v7 = vld [vmem:[%s4191_s8 + $0x10] ss:$8 sps:$4 sm:$0xff] (!%p506_p2)   ;;  %p584_p3 = scmp.lt.s32.totalorder (!%p506_p2), %s2726_s27, 3  ;;  %s2732_s19 = sshll.u32 (!%p506_p2), %s2721_s21, 4  ;;  %vm4199_vm1 = vcmask (!%p506_p2), 261120  }
   0x9   : > { %2886 = vmatpush3.bf16.msra.mxu1 (!%p506_p2), %v3368_v2  ;;  %3067 = vset.pattern.permute.xlu0 (!%p506_p2), %v3266_v4  ;;  %p602_p4 = scmp.lt.s32.totalorder (!%p506_p2), %s2732_s19, 31  ;;  %s3267_s17 = smov (!%p506_p2), 32   ;;  %v655_v15 = vshrl.u32 (!%p506_p2), %v654_v14, 7  ;;  %v652_v16 = vld [vmem:[%s4193_s10] sm:$0x3] (!%p506_p2) }
   0xa   : > { %750 = vmatpush1.bf16.msra.mxu0 (!%p506_p2), %v3087_v3  ;;  %2887 = vmatprep.subr.bf16.mxu1 (!%p506_p2), %v3264_v1  ;;  %s848_s30 = sld [smem:[#allocation2]] (!%p506_p2)  ;;  %s3269_s18 = smov (!%p506_p2), 96  }
   0xb   : > { %751 = vmatprep.subr.bf16.mxu0 (!%p506_p2), %v3088_v5  ;;  %3068 = vset.pattern.permute.xlu1 (!%p506_p2), %v3266_v4  ;;  %v660_v17 = vsub.s32 (!%p506_p2), 1, %v655_v15  ;;  %v656_v19 = vsub.s32 (!%p506_p2), 0, %v655_v15 }
   0xd   : > { %2888 = vmatpush3.bf16.msra.mxu1 (!%p506_p2), %v3385_v6  ;;  %v661_v18 = vrot.slane (!%p506_p2), %v652_v16, %v660_v17  ;;  %v3448_v20 = vrot.slane (!%p506_p2), %v652_v16, %v656_v19 }
   0xe   : > { %s4212_s27 = smov (!%p584_p3, %s2726_s27), 3  ;;  %s4214_s19 = smov (!%p602_p4, %s2732_s19), 31  ;;  %752 = vmatpush1.bf16.msra.mxu0 %v3091_v7  ;;  %2893 = vmatprep.subr.bf16.mxu1 %v3264_v1 }
   0xf   : > { %s3395_s22 = sshll.u32 %s4212_s27, 3  ;;  %s2733_s24 = sshll.u32 %s4214_s19, 2  ;;  %2949 = vmatprep.subr.bf16.mxu0 %v3264_v1 }
  0x10   : > { %s617_s21 = scalar_lea.vmem %s4189_s6, %s3395_s22  ;;  %s3408_s28 = scalar_lea.vmem %s4186_s3, %s2733_s24 }
  0x11   : > { %v3403_v8 = vld [vmem:[%s617_s21] sm:$0xff]  ;;  %s3414_s16 = scalar_lea.vmem %s4190_s7, %s3395_s22  ;;  %v3419_v11 = vld [vmem:[%s617_s21 + $0x8] sm:$0xff]  ;;  %s3463_s21 = scalar_lea.vmem %s4187_s4, %s3395_s22 }
  0x12   : > { %v863_v9 = vpack.c.bf16 %v3403_v8, %v3403_v8  ;;  %v3092_v10 = vld [vmem:[%s3408_s28] sm:$0xff]   ;;  %v965_v13 = vpack.c.bf16 %v3419_v11, %v3419_v11  ;;  %v857_v41 = vld [vmem:[%s3414_s16 + $0x8] sm:$0xff]  ;;  %s3268_s24 = smov 64  }
  0x13   : > { %v850_v12 = vld [vmem:[%s3414_s16] sm:$0xff]  ;;  %2754 = vmatmul.mubr.msk.bf16.vlgmr.msra.gmra.mrb[0].mxu0 %vm4199_vm1, %v3092_v10  ;;  %v859_v0 = vld [vmem:[%s3463_s21 + $0x8] sm:$0xff]  ;;  %s4011_s16 = sshll.u32 %s4212_s27, 2  ;;  %s629_s27 = scalar_lea.vmem %s4198_s15, %s3395_s22 }
  0x14   : > { %2890 = vmatmul.mubr.msk.bf16.vlgmr.msra.gmra.mrb[0].mxu1 %vm4199_vm1, %v863_v9  ;;  %932 = vrot.lane.b32.xlu1 %v850_v12, %s3267_s17  ;;  %v852_v42 = vld [vmem:[%s3463_s21] sm:$0xff]  ;;  %v3093_v5 = vld [vmem:[%s3408_s28 + $0x8] sm:$0xff]   ;;  %s593_s23 = scalar_lea.vmem %s4184_s1, %s4011_s16  ;;  %s599_s25 = scalar_lea.vmem %s4185_s2, %s4011_s16 }
  0x15   : > { %2894 = vmatpush3.bf16.msra.mxu1 %v3368_v2  ;;  %2897 = vmatprep.mubr.msk.bf16.mxu1 %vm3265_vm0, %v3264_v1  ;;  %s587_s26 = scalar_lea.vmem %s4183_s0, %s4011_s16 }
  0x16   : > { %2895 = vmatprep.subr.bf16.mxu1 %v3264_v1  ;;  %791 = vmatprep.mubr.bf16.mxu0 %v3266_v4 }
  0x17   : > { %2950 = vmatpush3.bf16.msra.mxu0 %v3368_v2 }
  0x18   : > { %2951 = vmatprep.subr.bf16.mxu0 %v3264_v1 }
  0x19   : > { %2896 = vmatpush3.bf16.msra.mxu1 %v3385_v6 }
  0x1a   : > { %2901 = vmatprep.subr.bf16.mxu1 %v3264_v1 }
  0x1b   : > { %2952 = vmatpush3.bf16.msra.mxu0 %v3385_v6 }
  0x1c   : > { %2898 = vmatmul.mubr.msk.bf16.vlgmr.msra.gmra.mrb[4].mxu1 %vm4199_vm1, %v965_v13  ;;  %2965 = vmatprep.subr.bf16.mxu0 %v3264_v1 }
  0x1d   : > { %2902 = vmatpush3.bf16.msra.mxu1 %v3368_v2  ;;  %2905 = vmatprep.mubr.msk.bf16.mxu1 %vm3265_vm0, %v3264_v1 }
  0x1e   : > { %2903 = vmatprep.subr.bf16.mxu1 %v3264_v1  ;;  %2755 = vmatmul.mubr.msk.bf16.gmra.mrb[4].mxu0 %vm4199_vm1, %v3093_v5 }
  0x1f   : > { %799 = vmatprep.mubr.bf16.mxu0 %v3266_v4 }
  0x21   : > { %2904 = vmatpush3.bf16.msra.mxu1 %v3385_v6 }
  0x22   : > { %2909 = vmatprep.subr.bf16.mxu1 %v3264_v1 }
  0x86   : > { %v3473_v55 = vpop.permute.xlu1 %932 }
  0xe6   : > { %v783_v22 = vpop.f32.mrb[0].mxu0 }
  0xe7   : > { %v917_v21 = vpop.f32.mrb[0].mxu1  ;;  %v784_v23 = vadd.f32 %v783_v22, %v3448_v20  ;;  %v785_v25 = vpop.f32.mrb[1].mxu0 }
  0xe8   : > { %v2891_v24 = vpop.f32.mrb[1].mxu1  ;;  %v3451_v26 = vadd.f32 %v785_v25, %v661_v18  ;;  %v787_v28 = vpop.f32.mrb[2].mxu0 }
  0xe9   : > { %v920_v27 = vpop.f32.mrb[2].mxu1  ;;  %v923_v29 = vadd.f32 %v917_v21, %v784_v23  ;;  %v789_v31 = vpop.f32.mrb[3].mxu0  ;;  %v788_v33 = vadd.f32 %v787_v28, %v3448_v20 }
  0xea   : > { %v2892_v30 = vpop.f32.mrb[3].mxu1  ;;  %v3453_v32 = vadd.f32 %v789_v31, %v661_v18 }
  0xeb   : > { %3120 = vtanh.f32 %v923_v29  ;;  %v2765_v43 = vmul.f32 -1.442695, %v923_v29 }
  0xef   : > { %v1003_v34 = vpop.f32.mrb[4].mxu1 }
  0xf0   : > { %v1009_v35 = vadd.f32 %v1003_v34, %v788_v33  ;;  %v2899_v36 = vpop.f32.mrb[5].mxu1 }
  0xf1   : > { %v1006_v37 = vpop.f32.mrb[6].mxu1  ;;  %v793_v19 = vpop.f32.mrb[4].mxu0 }
  0xf2   : > { %3122 = vtanh.f32 %v1009_v35  ;;  %v2900_v38 = vpop.f32.mrb[7].mxu1  ;;  %v2767_v44 = vmul.f32 -1.442695, %v1009_v35  ;;  %v795_v21 = vpop.f32.mrb[5].mxu0  ;;  %v794_v27 = vadd.f32 %v793_v19, %v3448_v20 }
  0xf3   : > { %3124 = vpow2.f32 %v2765_v43  ;;  %v796_v24 = vpop.f32.mrb[6].mxu0 }
  0xf4   : > { %3126 = vpow2.f32 %v2767_v44  ;;  %v798_v25 = vpop.f32.mrb[7].mxu0  ;;  %v797_v35 = vadd.f32 %v796_v24, %v3448_v20 }
  0xf5   : > { %v3121_v39 = vpop.eup %3120 }
  0xf6   : > { %937 = vrot.lane.b32.xlu0 %v3121_v39, %s3267_s17 }
  0xfc   : > { %v3123_v40 = vpop.eup %3122 }
  0xfd   : > { %1023 = vrot.lane.b32.xlu0 %v3123_v40, %s3267_s17  ;;  %v3125_v45 = vpop.eup %3124 }
  0xfe   : > { %v927_v46 = vadd.f32 1.0, %v3125_v45  ;;  %v3127_v47 = vpop.eup %3126 }
  0xff   : > { %v1013_v48 = vadd.f32 1.0, %v3127_v47 }
 0x100   : > { %3128 = vrcp.f32 %v927_v46 }
 0x101   : > { %1018 = vrot.lane.b32.xlu0 %v857_v41, %s3267_s17  ;;  %3130 = vrcp.f32 %v1013_v48 }
 0x105   : > { %854 = vperm.xlu0 %3067, %v852_v42  }
 0x109   : > { %954 = vrot.lane.b32.xlu0 %v3403_v8, %s3268_s24 }
 0x10a   : > { %v3129_v49 = vpop.eup %3128 }
 0x10b   : > { %v3131_v52 = vpop.eup %3130  ;;  %v935_v56 = vmul.f32 %v3129_v49, %v3473_v55 }
 0x10d   : > { %1040 = vrot.lane.b32.xlu0 %v3419_v11, %s3268_s24 }
 0x168   : > { %v938_v50 = vpop.permute.xlu0 %937 }
 0x169   : > { %v940_v51 = vmul.f32 %v3129_v49, %v938_v50 }
 0x16b   : > { %942 = vrot.lane.b32.xlu1 %v940_v51, %s3267_s17 }
 0x16f   : > { %v1024_v53 = vpop.permute.xlu0 %1023 }
 0x170   : > { %v1026_v54 = vmul.f32 %v3131_v52, %v1024_v53 }
 0x172   : > { %1028 = vrot.lane.b32.xlu1 %v1026_v54, %s3267_s17 }
 0x173   : > { %v3478_v59 = vpop.permute.xlu0 %1018 }
 0x174   : > { %v1021_v60 = vmul.f32 %v3131_v52, %v3478_v59 }
 0x184   : > { %v3491_v7 = vpop.permute.xlu0 %854 }
 0x185   : > { %vm952_vm2 = vcmp.gt.s32.totalorder %v3491_v7, 0  ;;  %vm1123_vm4 = vcmp.gt.s32.totalorder %v3491_v7, 1  ;;  %vm1287_vm6 = vcmp.gt.s32.totalorder %v3491_v7, 2  ;;  %vm1451_vm8 = vcmp.gt.s32.totalorder %v3491_v7, 3 }
 0x186   : > { %vm1615_vm10 = vcmp.gt.s32.totalorder %v3491_v7, 4  ;;  %vm1779_vm12 = vcmp.gt.s32.totalorder %v3491_v7, 5  ;;  %vm1943_vm14 = vcmp.gt.s32.totalorder %v3491_v7, 6 }
 0x188   : > { %v955_v9 = vpop.permute.xlu0 %954 }
 0x18c   : > { %v1041_v15 = vpop.permute.xlu0 %1040 }
 0x1dd   : > { %v943_v57 = vpop.permute.xlu1 %942 }
 0x1de   : > { %v3476_v58 = vadd.f32 %v943_v57, %v935_v56 }
 0x1e0   : > { %3132 = vtanh.f32 %v3476_v58  ;;  %v3541_v54 = vsel %vm952_vm2, %v3476_v58, %v3473_v55 }
 0x1e4   : > { %v1029_v61 = vpop.permute.xlu1 %1028 }
 0x1e5   : > { %v3482_v62 = vadd.f32 %v1029_v61, %v1021_v60 }
 0x1e7   : > { %3134 = vtanh.f32 %v3482_v62 }
 0x1ea   : > { %v3133_v63 = vpop.eup %3132 }
 0x1eb   : > { %948 = vrot.lane.b32.xlu1 %v3133_v63, %s3267_s17 }
 0x1ef   : > { %861 = vperm.xlu1 %3068, %v859_v0  }
 0x1f1   : > { %v3135_v3 = vpop.eup %3134 }
 0x1f3   : > { %1034 = vrot.lane.b32.xlu1 %v3135_v3, %s3267_s17  ;;  %v3094_v3 = vld [vmem:[%s3408_s28 + $0x10] sm:$0xff]  }
 0x1f4   : > { %2756 = vmatmul.mubr.msk.bf16.gmra.mrb[8].mxu0 %vm4199_vm1, %v3094_v3  ;;  %v3095_v3 = vld [vmem:[%s3408_s28 + $0x18] sm:$0xff]  }
 0x1f5   : > { %807 = vmatprep.mubr.bf16.mxu0 %v3266_v4 }
 0x1fc   : > { %2757 = vmatmul.mubr.msk.bf16.gmra.mrb[12].mxu0 %vm4199_vm1, %v3095_v3 }
 0x1fd   : > { %815 = vmatprep.mubr.bf16.mxu0 %v3266_v4 }
 0x25d   : > { %v949_v8 = vpop.permute.xlu1 %948 }
 0x25e   : > { %v3493_v10 = vmul.f32 %v3129_v49, %v949_v8 }
 0x260   : > { %v3499_v11 = vsel %vm952_vm2, %v3493_v10, %v955_v9 }
 0x261   : > { %v1051_v12 = vpack.c.bf16 %v3499_v11, %v3499_v11 }
 0x263   : > { %1053 = vrot.lane.b32.xlu1 %v1051_v12, %s3268_s24 }
 0x26e   : > { %v3504_v13 = vpop.permute.xlu1 %861 }
 0x26f   : > { %vm1038_vm3 = vcmp.gt.s32.totalorder %v3504_v13, 0  ;;  %vm1205_vm5 = vcmp.gt.s32.totalorder %v3504_v13, 1  ;;  %vm1369_vm7 = vcmp.gt.s32.totalorder %v3504_v13, 2  ;;  %vm1533_vm9 = vcmp.gt.s32.totalorder %v3504_v13, 3 }
 0x270   : > { %v3552_v63 = vsel %vm1038_vm3, %v3482_v62, %v3478_v59  ;;  %vm1697_vm11 = vcmp.gt.s32.totalorder %v3504_v13, 4  ;;  %vm1861_vm13 = vcmp.gt.s32.totalorder %v3504_v13, 5  ;;  %vm4200_vm15 = vcmp.gt.s32.totalorder %v3504_v13, 6 }
 0x272   : > { %v1035_v14 = vpop.permute.xlu1 %1034 }
 0x273   : > { %v3506_v16 = vmul.f32 %v3131_v52, %v1035_v14 }
 0x275   : > { %v3512_v17 = vsel %vm1038_vm3, %v3506_v16, %v1041_v15 }
 0x276   : > { %v1133_v18 = vpack.c.bf16 %v3512_v17, %v3512_v17 }
 0x278   : > { %1135 = vrot.lane.b32.xlu0 %v1133_v18, %s3268_s24 }
 0x2c7   : > { %v801_v18 = vpop.f32.mrb[8].mxu0 }
 0x2c8   : > { %v803_v19 = vpop.f32.mrb[9].mxu0  ;;  %v802_v24 = vadd.f32 %v801_v18, %v3448_v20 }
 0x2d5   : > { %v1054_v22 = vpop.permute.xlu1 %1053 }
 0x2d6   : > { %2906 = vmatmul.mubr.msk.bf16.vlgmr.msra.gmra.mrb[8].mxu1 %vm4199_vm1, %v1054_v22  ;;  %v804_v22 = vpop.f32.mrb[10].mxu0 }
 0x2d7   : > { %2910 = vmatpush3.bf16.msra.mxu1 %v3368_v2  ;;  %2913 = vmatprep.mubr.msk.bf16.mxu1 %vm3265_vm0, %v3264_v1 }
 0x2d8   : > { %2911 = vmatprep.subr.bf16.mxu1 %v3264_v1 }
 0x2db   : > { %2912 = vmatpush3.bf16.msra.mxu1 %v3385_v6 }
 0x2dc   : > { %2917 = vmatprep.subr.bf16.mxu1 %v3264_v1 }
 0x2ea   : > { %v1136_v23 = vpop.permute.xlu0 %1135 }
 0x2eb   : > { %2914 = vmatmul.mubr.msk.bf16.vlgmr.msra.gmra.mrb[12].mxu1 %vm4199_vm1, %v1136_v23  ;;  %v806_v23 = vpop.f32.mrb[11].mxu0 }
 0x2ec   : > { %2918 = vmatpush3.bf16.msra.mxu1 %v3368_v2  ;;  %2921 = vmatprep.mubr.msk.bf16.mxu1 %vm3265_vm0, %v3264_v1  ;;  %v809_v19 = vpop.f32.mrb[12].mxu0 }
 0x2ed   : > { %2919 = vmatprep.subr.bf16.mxu1 %v3264_v1 }
 0x2f0   : > { %2920 = vmatpush3.bf16.msra.mxu1 %v3385_v6 }
 0x2f1   : > { %2925 = vmatprep.subr.bf16.mxu1 %v3264_v1 }
 0x3a9   : > { %v1092_v28 = vpop.f32.mrb[8].mxu1 }
 0x3aa   : > { %v1098_v29 = vadd.f32 %v1092_v28, %v794_v27  ;;  %v2907_v30 = vpop.f32.mrb[9].mxu1 }
 0x3ab   : > { %v1095_v31 = vpop.f32.mrb[10].mxu1 }
 0x3ac   : > { %3136 = vtanh.f32 %v1098_v29  ;;  %v2908_v33 = vpop.f32.mrb[11].mxu1  ;;  %v2769_v42 = vmul.f32 -1.442695, %v1098_v29 }
 0x3ad   : > { %v805_v33 = vadd.f32 %v804_v22, %v3448_v20 }
 0x3b6   : > { %v3137_v34 = vpop.eup %3136 }
 0x3b7   : > { %1108 = vrot.lane.b32.xlu1 %v3137_v34, %s3267_s17 }
 0x3be   : > { %v1174_v36 = vpop.f32.mrb[12].mxu1 }
 0x3bf   : > { %v1180_v37 = vadd.f32 %v1174_v36, %v797_v35  ;;  %v2915_v38 = vpop.f32.mrb[13].mxu1 }
 0x3c0   : > { %v1177_v39 = vpop.f32.mrb[14].mxu1 }
 0x3c1   : > { %3138 = vtanh.f32 %v1180_v37  ;;  %v2916_v40 = vpop.f32.mrb[15].mxu1  ;;  %v2771_v45 = vmul.f32 -1.442695, %v1180_v37 }
 0x3c2   : > { %3140 = vpow2.f32 %v2769_v42 }
 0x3cb   : > { %v3139_v41 = vpop.eup %3138 }
 0x3cc   : > { %1190 = vrot.lane.b32.xlu0 %v3139_v41, %s3267_s17  ;;  %v3141_v43 = vpop.eup %3140 }
 0x3cd   : > { %v1102_v44 = vadd.f32 1.0, %v3141_v43 }
 0x3cf   : > { %3142 = vrcp.f32 %v1102_v44 }
 0x3d0   : > { %3144 = vpow2.f32 %v2771_v45 }
 0x3d9   : > { %v3143_v46 = vpop.eup %3142 }
 0x3da   : > { %v3145_v49 = vpop.eup %3144  ;;  %v1106_v56 = vmul.f32 %v3143_v46, %v3541_v54 }
 0x3db   : > { %v1184_v50 = vadd.f32 1.0, %v3145_v49 }
 0x3dd   : > { %3146 = vrcp.f32 %v1184_v50 }
 0x3e7   : > { %v3147_v51 = vpop.eup %3146 }
 0x3e8   : > { %v1188_v0 = vmul.f32 %v3147_v51, %v3552_v63 }
 0x429   : > { %v1109_v47 = vpop.permute.xlu1 %1108 }
 0x42a   : > { %v1111_v48 = vmul.f32 %v3143_v46, %v1109_v47 }
 0x42c   : > { %1113 = vrot.lane.b32.xlu1 %v1111_v48, %s3267_s17 }
 0x43e   : > { %v1191_v52 = vpop.permute.xlu0 %1190 }
 0x43f   : > { %v1193_v53 = vmul.f32 %v3147_v51, %v1191_v52 }
 0x441   : > { %1195 = vrot.lane.b32.xlu0 %v1193_v53, %s3267_s17 }
 0x49e   : > { %v1114_v57 = vpop.permute.xlu1 %1113 }
 0x49f   : > { %v3544_v60 = vadd.f32 %v1114_v57, %v1106_v56 }
 0x4a1   : > { %3148 = vtanh.f32 %v3544_v60  ;;  %v3610_v52 = vsel %vm1123_vm4, %v3544_v60, %v3541_v54 }
 0x4ab   : > { %v3149_v61 = vpop.eup %3148 }
 0x4ac   : > { %1119 = vrot.lane.b32.xlu1 %v3149_v61, %s3267_s17 }
 0x4b3   : > { %v1196_v55 = vpop.permute.xlu0 %1195 }
 0x4b4   : > { %v3555_v58 = vadd.f32 %v1196_v55, %v1188_v0 }
 0x4b6   : > { %3150 = vtanh.f32 %v3555_v58  ;;  %v3621_v0 = vsel %vm1205_vm5, %v3555_v58, %v3552_v63 }
 0x4c0   : > { %v3151_v5 = vpop.eup %3150 }
 0x4c1   : > { %1201 = vrot.lane.b32.xlu0 %v3151_v5, %s3267_s17 }
 0x51e   : > { %v1120_v8 = vpop.permute.xlu1 %1119 }
 0x51f   : > { %v3562_v9 = vmul.f32 %v3143_v46, %v1120_v8 }
 0x521   : > { %v3569_v59 = vsel %vm1123_vm4, %v3562_v9, %v3499_v11 }
 0x522   : > { %v1215_v62 = vpack.c.bf16 %v3569_v59, %v3569_v59 }
 0x524   : > { %1217 = vrot.lane.b32.xlu1 %v1215_v62, %s3268_s24 }
 0x533   : > { %v1202_v12 = vpop.permute.xlu0 %1201 }
 0x534   : > { %v3574_v14 = vmul.f32 %v3147_v51, %v1202_v12 }
 0x536   : > { %v3581_v15 = vsel %vm1205_vm5, %v3574_v14, %v3512_v17 }
 0x537   : > { %v1297_v11 = vpack.c.bf16 %v3581_v15, %v3581_v15 }
 0x539   : > { %1299 = vrot.lane.b32.xlu0 %v1297_v11, %s3268_s24 }
 0x596   : > { %v1218_v21 = vpop.permute.xlu1 %1217 }
 0x597   : > { %2922 = vmatmul.mubr.msk.bf16.vlgmr.msra.gmra.mrb[16].mxu1 %vm4199_vm1, %v1218_v21  ;;  %v811_v21 = vpop.f32.mrb[13].mxu0 }
 0x598   : > { %2926 = vmatpush3.bf16.msra.mxu1 %v3368_v2  ;;  %2929 = vmatprep.mubr.msk.bf16.mxu1 %vm3265_vm0, %v3264_v1  ;;  %v812_v22 = vpop.f32.mrb[14].mxu0 }
 0x599   : > { %2927 = vmatprep.subr.bf16.mxu1 %v3264_v1  ;;  %v814_v23 = vpop.f32.mrb[15].mxu0 }
 0x59c   : > { %2928 = vmatpush3.bf16.msra.mxu1 %v3385_v6 }
 0x59d   : > { %2933 = vmatprep.subr.bf16.mxu1 %v3264_v1 }
 0x5ab   : > { %v1300_v17 = vpop.permute.xlu0 %1299 }
 0x5ac   : > { %2930 = vmatmul.mubr.msk.bf16.vlgmr.msra.gmra.mrb[20].mxu1 %vm4199_vm1, %v1300_v17 }
 0x5ad   : > { %2934 = vmatpush3.bf16.msra.mxu1 %v3368_v2  ;;  %2937 = vmatprep.mubr.msk.bf16.mxu1 %vm3265_vm0, %v3264_v1 }
 0x5ae   : > { %2935 = vmatprep.subr.bf16.mxu1 %v3264_v1 }
 0x5b1   : > { %2936 = vmatpush3.bf16.msra.mxu1 %v3385_v6 }
 0x5b2   : > { %2941 = vmatprep.subr.bf16.mxu1 %v3264_v1 }
 0x66a   : > { %v1256_v25 = vpop.f32.mrb[16].mxu1 }
 0x66b   : > { %v1262_v27 = vadd.f32 %v1256_v25, %v802_v24  ;;  %v2923_v28 = vpop.f32.mrb[17].mxu1  ;;  %v810_v24 = vadd.f32 %v809_v19, %v3448_v20 }
 0x66c   : > { %v1259_v29 = vpop.f32.mrb[18].mxu1 }
 0x66d   : > { %3152 = vtanh.f32 %v1262_v27  ;;  %v2924_v30 = vpop.f32.mrb[19].mxu1  ;;  %v2773_v40 = vmul.f32 -1.442695, %v1262_v27 }
 0x677   : > { %v3153_v31 = vpop.eup %3152 }
 0x678   : > { %1272 = vrot.lane.b32.xlu1 %v3153_v31, %s3267_s17 }
 0x67f   : > { %v1338_v34 = vpop.f32.mrb[20].mxu1 }
 0x680   : > { %v1344_v35 = vadd.f32 %v1338_v34, %v805_v33  ;;  %v2931_v36 = vpop.f32.mrb[21].mxu1  ;;  %v813_v33 = vadd.f32 %v812_v22, %v3448_v20 }
 0x681   : > { %v1341_v37 = vpop.f32.mrb[22].mxu1 }
 0x682   : > { %3154 = vtanh.f32 %v1344_v35  ;;  %v2932_v38 = vpop.f32.mrb[23].mxu1  ;;  %v2775_v43 = vmul.f32 -1.442695, %v1344_v35 }
 0x683   : > { %3156 = vpow2.f32 %v2773_v40 }
 0x68c   : > { %v3155_v39 = vpop.eup %3154 }
 0x68d   : > { %1354 = vrot.lane.b32.xlu0 %v3155_v39, %s3267_s17  ;;  %v3157_v41 = vpop.eup %3156 }
 0x68e   : > { %v1266_v42 = vadd.f32 1.0, %v3157_v41 }
 0x690   : > { %3158 = vrcp.f32 %v1266_v42 }
 0x691   : > { %3160 = vpow2.f32 %v2775_v43 }
 0x69a   : > { %v3159_v44 = vpop.eup %3158 }
 0x69b   : > { %v3161_v47 = vpop.eup %3160  ;;  %v1270_v53 = vmul.f32 %v3159_v44, %v3610_v52 }
 0x69c   : > { %v1348_v48 = vadd.f32 1.0, %v3161_v47 }
 0x69e   : > { %3162 = vrcp.f32 %v1348_v48 }
 0x6a8   : > { %v3163_v49 = vpop.eup %3162 }
 0x6a9   : > { %v1352_v55 = vmul.f32 %v3163_v49, %v3621_v0 }
 0x6ea   : > { %v1273_v45 = vpop.permute.xlu1 %1272 }
 0x6eb   : > { %v1275_v46 = vmul.f32 %v3159_v44, %v1273_v45 }
 0x6ed   : > { %1277 = vrot.lane.b32.xlu1 %v1275_v46, %s3267_s17 }
 0x6ff   : > { %v1355_v50 = vpop.permute.xlu0 %1354 }
 0x700   : > { %v1357_v51 = vmul.f32 %v3163_v49, %v1355_v50 }
 0x702   : > { %1359 = vrot.lane.b32.xlu0 %v1357_v51, %s3267_s17 }
 0x75f   : > { %v1278_v56 = vpop.permute.xlu1 %1277 }
 0x760   : > { %v3613_v57 = vadd.f32 %v1278_v56, %v1270_v53 }
 0x762   : > { %3164 = vtanh.f32 %v3613_v57  ;;  %v3679_v53 = vsel %vm1287_vm6, %v3613_v57, %v3610_v52 }
 0x76c   : > { %v3165_v61 = vpop.eup %3164 }
 0x76d   : > { %1283 = vrot.lane.b32.xlu1 %v3165_v61, %s3267_s17 }
 0x774   : > { %v1360_v54 = vpop.permute.xlu0 %1359 }
 0x775   : > { %v3624_v60 = vadd.f32 %v1360_v54, %v1352_v55 }
 0x777   : > { %3166 = vtanh.f32 %v3624_v60  ;;  %v3690_v3 = vsel %vm1369_vm7, %v3624_v60, %v3621_v0  ;;  %v3098_v0 = vld [vmem:[%s3408_s28 + $0x30] sm:$0xff]   ;;  %v3099_v60 = vld [vmem:[%s3408_s28 + $0x38] sm:$0xff]  }
 0x781   : > { %v3167_v5 = vpop.eup %3166 }
 0x782   : > { %1365 = vrot.lane.b32.xlu0 %v3167_v5, %s3267_s17 }
 0x7df   : > { %v1284_v8 = vpop.permute.xlu1 %1283 }
 0x7e0   : > { %v3631_v62 = vmul.f32 %v3159_v44, %v1284_v8  ;;  %v3096_v8 = vld [vmem:[%s3408_s28 + $0x20] sm:$0xff]  }
 0x7e1   : > { %2758 = vmatmul.mubr.msk.bf16.gmra.mrb[16].mxu0 %vm4199_vm1, %v3096_v8 }
 0x7e2   : > { %v3638_v63 = vsel %vm1287_vm6, %v3631_v62, %v3569_v59  ;;  %823 = vmatprep.mubr.bf16.mxu0 %v3266_v4 }
 0x7e3   : > { %v1379_v58 = vpack.c.bf16 %v3638_v63, %v3638_v63 }
 0x7e5   : > { %1381 = vrot.lane.b32.xlu1 %v1379_v58, %s3268_s24  ;;  %v3097_v58 = vld [vmem:[%s3408_s28 + $0x28] sm:$0xff]  }
 0x7e9   : > { %2759 = vmatmul.mubr.msk.bf16.gmra.mrb[20].mxu0 %vm4199_vm1, %v3097_v58 }
 0x7ea   : > { %831 = vmatprep.mubr.bf16.mxu0 %v3266_v4 }
 0x7f1   : > { %2760 = vmatmul.mubr.msk.bf16.gmra.mrb[24].mxu0 %vm4199_vm1, %v3098_v0 }
 0x7f2   : > { %839 = vmatprep.mubr.bf16.mxu0 %v3266_v4 }
 0x7f4   : > { %v1366_v12 = vpop.permute.xlu0 %1365 }
 0x7f5   : > { %v3643_v11 = vmul.f32 %v3163_v49, %v1366_v12 }
 0x7f7   : > { %v3650_v18 = vsel %vm1369_vm7, %v3643_v11, %v3581_v15 }
 0x7f8   : > { %v1461_v59 = vpack.c.bf16 %v3650_v18, %v3650_v18 }
 0x7f9   : > { %2761 = vmatmul.mubr.msk.bf16.gmra.mrb[28].mxu0 %vm4199_vm1, %v3099_v60 }
 0x7fa   : > { %1463 = vrot.lane.b32.xlu0 %v1461_v59, %s3268_s24  ;;  %2953 = vmatprep.mubr.msk.bf16.mxu0 %vm3265_vm0, %v3264_v1 }
 0x857   : > { %v1382_v17 = vpop.permute.xlu1 %1381 }
 0x858   : > { %2938 = vmatmul.mubr.msk.bf16.vlgmr.msra.gmra.mrb[24].mxu1 %vm4199_vm1, %v1382_v17 }
 0x859   : > { %2942 = vmatpush3.bf16.msra.mxu1 %v3368_v2  ;;  %2945 = vmatprep.mubr.msk.bf16.mxu1 %vm3265_vm0, %v3264_v1 }
 0x85a   : > { %2943 = vmatprep.subr.bf16.mxu1 %v3264_v1 }
 0x85d   : > { %2944 = vmatpush3.bf16.msra.mxu1 %v3385_v6 }
 0x85e   : > { %2957 = vmatprep.subr.bf16.mxu1 %v3264_v1 }
 0x86c   : > { %v1464_v15 = vpop.permute.xlu0 %1463 }
 0x86d   : > { %2946 = vmatmul.mubr.msk.bf16.vlgmr.msra.gmra.mrb[28].mxu1 %vm4199_vm1, %v1464_v15 }
 0x86e   : > { %2958 = vmatpush3.bf16.msra.mxu1 %v3368_v2  ;;  %2961 = vmatprep.mubr.msk.bf16.mxu1 %vm3265_vm0, %v3264_v1 }
 0x86f   : > { %2959 = vmatprep.subr.bf16.mxu1 %v3264_v1 }
 0x872   : > { %2960 = vmatpush3.bf16.msra.mxu1 %v3385_v6 }
 0x873   : > { %2973 = vmatprep.subr.bf16.mxu1 %v3264_v1 }
 0x92b   : > { %v1420_v25 = vpop.f32.mrb[24].mxu1 }
 0x92c   : > { %v1426_v27 = vadd.f32 %v1420_v25, %v810_v24  ;;  %v2939_v28 = vpop.f32.mrb[25].mxu1  ;;  %v817_v24 = vpop.f32.mrb[16].mxu0 }
 0x92d   : > { %v1423_v29 = vpop.f32.mrb[26].mxu1  ;;  %v819_v25 = vpop.f32.mrb[17].mxu0 }
 0x92e   : > { %3168 = vtanh.f32 %v1426_v27  ;;  %v2940_v30 = vpop.f32.mrb[27].mxu1  ;;  %v2777_v40 = vmul.f32 -1.442695, %v1426_v27  ;;  %v820_v27 = vpop.f32.mrb[18].mxu0 }
 0x92f   : > { %v822_v28 = vpop.f32.mrb[19].mxu0 }
 0x930   : > { %v3734_v30 = vpop.f32.mrb[20].mxu0 }
 0x938   : > { %v3169_v31 = vpop.eup %3168 }
 0x939   : > { %1436 = vrot.lane.b32.xlu1 %v3169_v31, %s3267_s17  ;;  %v827_v31 = vpop.f32.mrb[21].mxu0 }
 0x940   : > { %v1502_v34 = vpop.f32.mrb[28].mxu1 }
 0x941   : > { %v1508_v35 = vadd.f32 %v1502_v34, %v813_v33  ;;  %v2947_v36 = vpop.f32.mrb[29].mxu1  ;;  %v3737_v33 = vpop.f32.mrb[22].mxu0 }
 0x942   : > { %v1505_v37 = vpop.f32.mrb[30].mxu1 }
 0x943   : > { %3170 = vtanh.f32 %v1508_v35  ;;  %v2948_v38 = vpop.f32.mrb[31].mxu1  ;;  %v2779_v43 = vmul.f32 -1.442695, %v1508_v35 }
 0x944   : > { %3172 = vpow2.f32 %v2777_v40 }
 0x94d   : > { %v3171_v39 = vpop.eup %3170 }
 0x94e   : > { %1518 = vrot.lane.b32.xlu0 %v3171_v39, %s3267_s17  ;;  %v3173_v41 = vpop.eup %3172 }
 0x94f   : > { %v1430_v42 = vadd.f32 1.0, %v3173_v41 }
 0x951   : > { %3174 = vrcp.f32 %v1430_v42 }
 0x952   : > { %3176 = vpow2.f32 %v2779_v43  ;;  %v818_v43 = vadd.f32 %v817_v24, %v3448_v20 }
 0x95b   : > { %v3175_v44 = vpop.eup %3174 }
 0x95c   : > { %v3177_v47 = vpop.eup %3176  ;;  %v1434_v56 = vmul.f32 %v3175_v44, %v3679_v53 }
 0x95d   : > { %v1512_v48 = vadd.f32 1.0, %v3177_v47 }
 0x95f   : > { %3178 = vrcp.f32 %v1512_v48 }
 0x969   : > { %v3179_v49 = vpop.eup %3178 }
 0x96a   : > { %v1516_v52 = vmul.f32 %v3179_v49, %v3690_v3 }
 0x9ab   : > { %v1437_v45 = vpop.permute.xlu1 %1436 }
 0x9ac   : > { %v1439_v46 = vmul.f32 %v3175_v44, %v1437_v45 }
 0x9ae   : > { %1441 = vrot.lane.b32.xlu1 %v1439_v46, %s3267_s17 }
 0x9c0   : > { %v1519_v50 = vpop.permute.xlu0 %1518 }
 0x9c1   : > { %v1521_v51 = vmul.f32 %v3179_v49, %v1519_v50 }
 0x9c3   : > { %1523 = vrot.lane.b32.xlu0 %v1521_v51, %s3267_s17 }
 0xa20   : > { %v1442_v61 = vpop.permute.xlu1 %1441 }
 0xa21   : > { %v3682_v55 = vadd.f32 %v1442_v61, %v1434_v56 }
 0xa23   : > { %3180 = vtanh.f32 %v3682_v55  ;;  %v3770_v25 = vsel %vm1451_vm8, %v3682_v55, %v3679_v53 }
 0xa2d   : > { %v3181_v54 = vpop.eup %3180 }
 0xa2e   : > { %1447 = vrot.lane.b32.xlu1 %v3181_v54, %s3267_s17 }
 0xa35   : > { %v1524_v57 = vpop.permute.xlu0 %1523 }
 0xa36   : > { %v3693_v5 = vadd.f32 %v1524_v57, %v1516_v52 }
 0xa38   : > { %3182 = vtanh.f32 %v3693_v5 }
 0xa42   : > { %v3183_v12 = vpop.eup %3182 }
 0xa43   : > { %1529 = vrot.lane.b32.xlu0 %v3183_v12, %s3267_s17 }
 0xaa0   : > { %v1448_v59 = vpop.permute.xlu1 %1447 }
 0xaa1   : > { %v3710_v19 = vmul.f32 %v3175_v44, %v1448_v59 }
 0xaa3   : > { %v3717_v21 = vsel %vm1451_vm8, %v3710_v19, %v3638_v63 }
 0xaa4   : > { %v1543_v17 = vpack.c.bf16 %v3717_v21, %v3717_v21 }
 0xaa6   : > { %1545 = vrot.lane.b32.xlu1 %v1543_v17, %s3268_s24 }
 0xab5   : > { %v1530_v15 = vpop.permute.xlu0 %1529 }
 0xab6   : > { %v3722_v22 = vmul.f32 %v3179_v49, %v1530_v15 }
 0xab8   : > { %v3729_v23 = vsel %vm1533_vm9, %v3722_v22, %v3650_v18  ;;  %v830_v18 = vpop.f32.mrb[23].mxu0 }
 0xab9   : > { %v1625_v63 = vpack.c.bf16 %v3729_v23, %v3729_v23  ;;  %v3745_v34 = vpop.f32.mrb[24].mxu0  ;;  %v3781_v18 = vsel %vm1533_vm9, %v3693_v5, %v3690_v3 }
 0xaba   : > { %v835_v35 = vpop.f32.mrb[25].mxu0 }
 0xabb   : > { %1627 = vrot.lane.b32.xlu0 %v1625_v63, %s3268_s24  ;;  %v3747_v36 = vpop.f32.mrb[26].mxu0 }
 0xabc   : > { %v838_v37 = vpop.f32.mrb[27].mxu0 }
 0xabd   : > { %v3749_v38 = vpop.f32.mrb[28].mxu0 }
 0xabe   : > { %v843_v39 = vpop.f32.mrb[29].mxu0 }
 0xabf   : > { %v3751_v40 = vpop.f32.mrb[30].mxu0 }
 0xac0   : > { %v846_v41 = vpop.f32.mrb[31].mxu0 }
 0xb18   : > { %v1546_v29 = vpop.permute.xlu1 %1545 }
 0xb19   : > { %2954 = vmatmul.mubr.msk.bf16.vlgmr.msra.gmra.mrb[32].mxu0 %vm4199_vm1, %v1546_v29 }
 0xb1a   : > { %2966 = vmatpush3.bf16.msra.mxu0 %v3368_v2  ;;  %2969 = vmatprep.mubr.msk.bf16.mxu0 %vm3265_vm0, %v3264_v1 }
 0xb1b   : > { %2967 = vmatprep.subr.bf16.mxu0 %v3264_v1 }
 0xb1e   : > { %2968 = vmatpush3.bf16.msra.mxu0 %v3385_v6 }
 0xb1f   : > { %2981 = vmatprep.subr.bf16.mxu0 %v3264_v1 }
 0xb2d   : > { %v1628_v42 = vpop.permute.xlu0 %1627 }
 0xb2e   : > { %2962 = vmatmul.mubr.msk.bf16.vlgmr.msra.gmra.mrb[32].mxu1 %vm4199_vm1, %v1628_v42 }
 0xb2f   : > { %2974 = vmatpush3.bf16.msra.mxu1 %v3368_v2  ;;  %2977 = vmatprep.mubr.msk.bf16.mxu1 %vm3265_vm0, %v3264_v1  ;;  %v821_v2 = vadd.f32 %v820_v27, %v3448_v20 }
 0xb30   : > { %2975 = vmatprep.subr.bf16.mxu1 %v3264_v1 }
 0xb33   : > { %2976 = vmatpush3.bf16.msra.mxu1 %v3385_v6 }
 0xb34   : > { %2989 = vmatprep.subr.bf16.mxu1 %v3264_v1 }
 0xbec   : > { %v1584_v44 = vpop.f32.mrb[32].mxu0 }
 0xbed   : > { %v1590_v45 = vadd.f32 %v1584_v44, %v818_v43  ;;  %v2955_v46 = vpop.f32.mrb[33].mxu0 }
 0xbee   : > { %v1587_v47 = vpop.f32.mrb[34].mxu0  ;;  %v3816_v46 = vld [vmem:[%s4192_s9] sm:$0xff]  }
 0xbef   : > { %3184 = vtanh.f32 %v1590_v45  ;;  %v2956_v48 = vpop.f32.mrb[35].mxu0  ;;  %v2781_v52 = vmul.f32 -1.442695, %v1590_v45 }
 0xbf0   : > { %v826_v48 = vadd.f32 %v3734_v30, %v3448_v20 }
 0xbf9   : > { %v3185_v49 = vpop.eup %3184 }
 0xbfa   : > { %1600 = vrot.lane.b32.xlu1 %v3185_v49, %s3267_s17 }
 0xc01   : > { %v1666_v50 = vpop.f32.mrb[32].mxu1 }
 0xc02   : > { %v1672_v51 = vadd.f32 %v1666_v50, %v821_v2  ;;  %v2963_v56 = vpop.f32.mrb[33].mxu1 }
 0xc03   : > { %v1669_v61 = vpop.f32.mrb[34].mxu1 }
 0xc04   : > { %3186 = vtanh.f32 %v1672_v51  ;;  %v2964_v6 = vpop.f32.mrb[35].mxu1  ;;  %v2783_v58 = vmul.f32 -1.442695, %v1672_v51 }
 0xc05   : > { %3188 = vpow2.f32 %v2781_v52  ;;  %v829_v6 = vadd.f32 %v3737_v33, %v3448_v20 }
 0xc0e   : > { %v3187_v54 = vpop.eup %3186 }
 0xc0f   : > { %1682 = vrot.lane.b32.xlu0 %v3187_v54, %s3267_s17  ;;  %v3189_v57 = vpop.eup %3188 }
 0xc10   : > { %v1594_v8 = vadd.f32 1.0, %v3189_v57 }
 0xc12   : > { %3190 = vrcp.f32 %v1594_v8 }
 0xc13   : > { %3192 = vpow2.f32 %v2783_v58 }
 0xc1c   : > { %v3191_v12 = vpop.eup %3190 }
 0xc1d   : > { %v3193_v59 = vpop.eup %3192  ;;  %v1598_v27 = vmul.f32 %v3191_v12, %v3770_v25 }
 0xc1e   : > { %v1676_v17 = vadd.f32 1.0, %v3193_v59 }
 0xc20   : > { %3194 = vrcp.f32 %v1676_v17 }
 0xc2a   : > { %v3195_v15 = vpop.eup %3194 }
 0xc2b   : > { %v1680_v35 = vmul.f32 %v3195_v15, %v3781_v18 }
 0xc6c   : > { %v1601_v0 = vpop.permute.xlu1 %1600 }
 0xc6d   : > { %v1603_v60 = vmul.f32 %v3191_v12, %v1601_v0 }
 0xc6f   : > { %1605 = vrot.lane.b32.xlu1 %v1603_v60, %s3267_s17 }
 0xc81   : > { %v1683_v63 = vpop.permute.xlu0 %1682 }
 0xc82   : > { %v1685_v24 = vmul.f32 %v3195_v15, %v1683_v63 }
 0xc84   : > { %1687 = vrot.lane.b32.xlu0 %v1685_v24, %s3267_s17 }
 0xce1   : > { %v1606_v28 = vpop.permute.xlu1 %1605 }
 0xce2   : > { %v3773_v29 = vadd.f32 %v1606_v28, %v1598_v27 }
 0xce4   : > { %3196 = vtanh.f32 %v3773_v29 }
 0xcee   : > { %v3197_v31 = vpop.eup %3196 }
 0xcef   : > { %1611 = vrot.lane.b32.xlu1 %v3197_v31, %s3267_s17 }
 0xcf6   : > { %v1688_v53 = vpop.permute.xlu0 %1687 }
 0xcf7   : > { %v3784_v55 = vadd.f32 %v1688_v53, %v1680_v35  ;;  %v3848_v35 = vsel %vm1615_vm10, %v3773_v29, %v3770_v25 }
 0xcf9   : > { %3198 = vtanh.f32 %v3784_v55 }
 0xd03   : > { %v3199_v37 = vpop.eup %3198 }
 0xd04   : > { %1693 = vrot.lane.b32.xlu0 %v3199_v37, %s3267_s17 }
 0xd61   : > { %v1612_v39 = vpop.permute.xlu1 %1611 }
 0xd62   : > { %v3788_v41 = vmul.f32 %v3191_v12, %v1612_v39 }
 0xd64   : > { %v3795_v3 = vsel %vm1615_vm10, %v3788_v41, %v3717_v21 }
 0xd65   : > { %v1707_v5 = vpack.c.bf16 %v3795_v3, %v3795_v3 }
 0xd67   : > { %1709 = vrot.lane.b32.xlu1 %v1707_v5, %s3268_s24 }
 0xd76   : > { %v1694_v42 = vpop.permute.xlu0 %1693 }
 0xd77   : > { %v3800_v43 = vmul.f32 %v3195_v15, %v1694_v42  ;;  %v3859_v42 = vsel %vm1697_vm11, %v3784_v55, %v3781_v18 }
 0xd79   : > { %v3807_v44 = vsel %vm1697_vm11, %v3800_v43, %v3729_v23  ;;  %v3825_v23 = vld [vmem:[%s4192_s9 + $0x8] sm:$0xff]  }
 0xd7a   : > { %v1789_v21 = vpack.c.bf16 %v3807_v44, %v3807_v44 }
 0xd7c   : > { %1791 = vrot.lane.b32.xlu0 %v1789_v21, %s3268_s24 }
 0xdd9   : > { %v1710_v45 = vpop.permute.xlu1 %1709 }
 0xdda   : > { %2970 = vmatmul.mubr.msk.bf16.vlgmr.msra.gmra.mrb[36].mxu0 %vm4199_vm1, %v1710_v45 }
 0xddb   : > { %2982 = vmatpush3.bf16.msra.mxu0 %v3816_v46  ;;  %2985 = vmatprep.mubr.msk.bf16.mxu0 %vm3265_vm0, %v3264_v1 }
 0xddc   : > { %2983 = vmatprep.subr.bf16.mxu0 %v3264_v1 }
 0xddf   : > { %2984 = vmatpush3.bf16.msra.mxu0 %v3825_v23 }
 0xde0   : > { %2997 = vmatprep.subr.bf16.mxu0 %v3264_v1 }
 0xdee   : > { %v1792_v47 = vpop.permute.xlu0 %1791 }
 0xdef   : > { %2978 = vmatmul.mubr.msk.bf16.vlgmr.msra.gmra.mrb[36].mxu1 %vm4199_vm1, %v1792_v47 }
 0xdf0   : > { %2990 = vmatpush3.bf16.msra.mxu1 %v3816_v46  ;;  %2993 = vmatprep.mubr.msk.bf16.mxu1 %vm3265_vm0, %v3264_v1 }
 0xdf1   : > { %2991 = vmatprep.subr.bf16.mxu1 %v3264_v1 }
 0xdf4   : > { %2992 = vmatpush3.bf16.msra.mxu1 %v3825_v23 }
 0xdf5   : > { %3005 = vmatprep.subr.bf16.mxu1 %v3264_v1 }
 0xead   : > { %v1748_v49 = vpop.f32.mrb[36].mxu0 }
 0xeae   : > { %v1754_v2 = vadd.f32 %v1748_v49, %v826_v48  ;;  %v2971_v50 = vpop.f32.mrb[37].mxu0 }
 0xeaf   : > { %v1751_v51 = vpop.f32.mrb[38].mxu0 }
 0xeb0   : > { %3200 = vtanh.f32 %v1754_v2  ;;  %v2972_v56 = vpop.f32.mrb[39].mxu0  ;;  %v2785_v30 = vmul.f32 -1.442695, %v1754_v2 }
 0xeb1   : > { %v834_v56 = vadd.f32 %v3745_v34, %v3448_v20 }
 0xeba   : > { %v3201_v61 = vpop.eup %3200 }
 0xebb   : > { %1764 = vrot.lane.b32.xlu1 %v3201_v61, %s3267_s17 }
 0xec2   : > { %v1830_v54 = vpop.f32.mrb[36].mxu1 }
 0xec3   : > { %v1836_v52 = vadd.f32 %v1830_v54, %v829_v6  ;;  %v2979_v57 = vpop.f32.mrb[37].mxu1 }
 0xec4   : > { %v1833_v8 = vpop.f32.mrb[38].mxu1 }
 0xec5   : > { %3202 = vtanh.f32 %v1836_v52  ;;  %v2980_v58 = vpop.f32.mrb[39].mxu1  ;;  %v2787_v59 = vmul.f32 -1.442695, %v1836_v52 }
 0xec6   : > { %3204 = vpow2.f32 %v2785_v30 }
 0xecf   : > { %v3203_v12 = vpop.eup %3202 }
 0xed0   : > { %1846 = vrot.lane.b32.xlu0 %v3203_v12, %s3267_s17  ;;  %v3205_v0 = vpop.eup %3204 }
 0xed1   : > { %v1758_v60 = vadd.f32 1.0, %v3205_v0 }
 0xed3   : > { %3206 = vrcp.f32 %v1758_v60 }
 0xed4   : > { %3208 = vpow2.f32 %v2787_v59 }
 0xedd   : > { %v3207_v17 = vpop.eup %3206 }
 0xede   : > { %v3209_v33 = vpop.eup %3208  ;;  %v1762_v53 = vmul.f32 %v3207_v17, %v3848_v35 }
 0xedf   : > { %v1840_v24 = vadd.f32 1.0, %v3209_v33 }
 0xee1   : > { %3210 = vrcp.f32 %v1840_v24 }
 0xeeb   : > { %v3211_v27 = vpop.eup %3210 }
 0xeec   : > { %v1844_v21 = vmul.f32 %v3211_v27, %v3859_v42 }
 0xf2d   : > { %v1765_v15 = vpop.permute.xlu1 %1764 }
 0xf2e   : > { %v1767_v63 = vmul.f32 %v3207_v17, %v1765_v15 }
 0xf30   : > { %1769 = vrot.lane.b32.xlu1 %v1767_v63, %s3267_s17 }
 0xf42   : > { %v1847_v28 = vpop.permute.xlu0 %1846 }
 0xf43   : > { %v1849_v31 = vmul.f32 %v3211_v27, %v1847_v28 }
 0xf45   : > { %1851 = vrot.lane.b32.xlu0 %v1849_v31, %s3267_s17 }
 0xfa2   : > { %v1770_v37 = vpop.permute.xlu1 %1769 }
 0xfa3   : > { %v3851_v39 = vadd.f32 %v1770_v37, %v1762_v53 }
 0xfa5   : > { %3212 = vtanh.f32 %v3851_v39  ;;  %v3916_v37 = vsel %vm1779_vm12, %v3851_v39, %v3848_v35 }
 0xfaf   : > { %v3213_v5 = vpop.eup %3212 }
 0xfb0   : > { %1775 = vrot.lane.b32.xlu1 %v3213_v5, %s3267_s17 }
 0xfb7   : > { %v1852_v25 = vpop.permute.xlu0 %1851 }
 0xfb8   : > { %v3862_v29 = vadd.f32 %v1852_v25, %v1844_v21 }
 0xfba   : > { %3214 = vtanh.f32 %v3862_v29 }
 0xfc4   : > { %v3215_v45 = vpop.eup %3214 }
 0xfc5   : > { %1857 = vrot.lane.b32.xlu0 %v3215_v45, %s3267_s17 }
0x1022   : > { %v1776_v47 = vpop.permute.xlu1 %1775 }
0x1023   : > { %v3866_v48 = vmul.f32 %v3207_v17, %v1776_v47  ;;  %v3927_v47 = vsel %vm1861_vm13, %v3862_v29, %v3859_v42 }
0x1025   : > { %v3873_v18 = vsel %vm1779_vm12, %v3866_v48, %v3795_v3 }
0x1026   : > { %v1871_v55 = vpack.c.bf16 %v3873_v18, %v3873_v18 }
0x1028   : > { %1873 = vrot.lane.b32.xlu1 %v1871_v55, %s3268_s24 }
0x1037   : > { %v1858_v49 = vpop.permute.xlu0 %1857 }
0x1038   : > { %v3878_v2 = vmul.f32 %v3211_v27, %v1858_v49 }
0x103a   : > { %v3885_v50 = vsel %vm1861_vm13, %v3878_v2, %v3807_v44 }
0x103b   : > { %v1953_v3 = vpack.c.bf16 %v3885_v50, %v3885_v50 }
0x103d   : > { %1955 = vrot.lane.b32.xlu0 %v1953_v3, %s3268_s24 }
0x109a   : > { %v1874_v51 = vpop.permute.xlu1 %1873 }
0x109b   : > { %2986 = vmatmul.mubr.msk.bf16.vlgmr.msra.gmra.mrb[40].mxu0 %vm4199_vm1, %v1874_v51 }
0x109c   : > { %2998 = vmatpush3.bf16.msra.mxu0 %v3816_v46  ;;  %3001 = vmatprep.mubr.msk.bf16.mxu0 %vm3265_vm0, %v3264_v1 }
0x109d   : > { %2999 = vmatprep.subr.bf16.mxu0 %v3264_v1 }
0x10a0   : > { %3000 = vmatpush3.bf16.msra.mxu0 %v3825_v23 }
0x10a1   : > { %3013 = vmatprep.subr.bf16.mxu0 %v3264_v1 }
0x10af   : > { %v1956_v44 = vpop.permute.xlu0 %1955 }
0x10b0   : > { %2994 = vmatmul.mubr.msk.bf16.vlgmr.msra.gmra.mrb[40].mxu1 %vm4199_vm1, %v1956_v44 }
0x10b1   : > { %3006 = vmatpush3.bf16.msra.mxu1 %v3816_v46  ;;  %3009 = vmatprep.mubr.msk.bf16.mxu1 %vm3265_vm0, %v3264_v1  ;;  %v837_v46 = vadd.f32 %v3747_v36, %v3448_v20 }
0x10b2   : > { %3007 = vmatprep.subr.bf16.mxu1 %v3264_v1 }
0x10b5   : > { %3008 = vmatpush3.bf16.msra.mxu1 %v3825_v23 }
0x10b6   : > { %3033 = vmatprep.subr.bf16.mxu1 %v3264_v1 }
0x116e   : > { %v1912_v61 = vpop.f32.mrb[40].mxu0 }
0x116f   : > { %v1918_v6 = vadd.f32 %v1912_v61, %v834_v56  ;;  %v2987_v54 = vpop.f32.mrb[41].mxu0 }
0x1170   : > { %v1915_v52 = vpop.f32.mrb[42].mxu0 }
0x1171   : > { %3216 = vtanh.f32 %v1918_v6  ;;  %v2988_v57 = vpop.f32.mrb[43].mxu0  ;;  %v2789_v34 = vmul.f32 -1.442695, %v1918_v6  ;;  %v842_v52 = vadd.f32 %v3749_v38, %v3448_v20 }
0x117b   : > { %v3217_v8 = vpop.eup %3216 }
0x117c   : > { %1928 = vrot.lane.b32.xlu1 %v3217_v8, %s3267_s17 }
0x1183   : > { %v1994_v58 = vpop.f32.mrb[40].mxu1 }
0x1184   : > { %v2000_v12 = vadd.f32 %v1994_v58, %v837_v46  ;;  %v2995_v23 = vpop.f32.mrb[41].mxu1 }
0x1185   : > { %v1997_v30 = vpop.f32.mrb[42].mxu1  ;;  %v845_v23 = vadd.f32 %v3751_v40, %v3448_v20 }
0x1186   : > { %3218 = vtanh.f32 %v2000_v12  ;;  %v2996_v0 = vpop.f32.mrb[43].mxu1  ;;  %v2791_v15 = vmul.f32 -1.442695, %v2000_v12 }
0x1187   : > { %3220 = vpow2.f32 %v2789_v34 }
0x1190   : > { %v3219_v60 = vpop.eup %3218 }
0x1191   : > { %2010 = vrot.lane.b32.xlu0 %v3219_v60, %s3267_s17  ;;  %v3221_v59 = vpop.eup %3220 }
0x1192   : > { %v1922_v17 = vadd.f32 1.0, %v3221_v59 }
0x1194   : > { %3222 = vrcp.f32 %v1922_v17 }
0x1195   : > { %3224 = vpow2.f32 %v2791_v15 }
0x119e   : > { %v3223_v63 = vpop.eup %3222 }
0x119f   : > { %v3225_v36 = vpop.eup %3224  ;;  %v1926_v5 = vmul.f32 %v3223_v63, %v3916_v37 }
0x11a0   : > { %v2004_v27 = vadd.f32 1.0, %v3225_v36 }
0x11a2   : > { %3226 = vrcp.f32 %v2004_v27 }
0x11ac   : > { %v3227_v28 = vpop.eup %3226 }
0x11ad   : > { %v2008_v55 = vmul.f32 %v3227_v28, %v3927_v47 }
0x11ee   : > { %v1929_v33 = vpop.permute.xlu1 %1928 }
0x11ef   : > { %v1931_v24 = vmul.f32 %v3223_v63, %v1929_v33 }
0x11f1   : > { %1933 = vrot.lane.b32.xlu1 %v1931_v24, %s3267_s17 }
0x1203   : > { %v2011_v31 = vpop.permute.xlu0 %2010 }
0x1204   : > { %v2013_v53 = vmul.f32 %v3227_v28, %v2011_v31 }
0x1206   : > { %2015 = vrot.lane.b32.xlu0 %v2013_v53, %s3267_s17 }
0x1263   : > { %v1934_v21 = vpop.permute.xlu1 %1933 }
0x1264   : > { %v3919_v25 = vadd.f32 %v1934_v21, %v1926_v5 }
0x1266   : > { %3228 = vtanh.f32 %v3919_v25  ;;  %v1945_v5 = vsel %vm1943_vm14, %v3919_v25, %v3916_v37  ;;  %v2195_v37 = vstv %s848_s30  ;;  %v3103_v25 = vld [vmem:[%s4195_s12] sm:$0xff]  }
0x1270   : > { %v3229_v45 = vpop.eup %3228 }
0x1271   : > { %1939 = vrot.lane.b32.xlu1 %v3229_v45, %s3267_s17 }
0x1278   : > { %v2016_v35 = vpop.permute.xlu0 %2015 }
0x1279   : > { %v3930_v39 = vadd.f32 %v2016_v35, %v2008_v55 }
0x127b   : > { %3230 = vtanh.f32 %v3930_v39 }
0x1285   : > { %v3231_v49 = vpop.eup %3230 }
0x1286   : > { %2021 = vrot.lane.b32.xlu0 %v3231_v49, %s3267_s17  ;;  %v2027_v49 = vsel %vm4200_vm15, %v3930_v39, %v3927_v47  ;;  %v3104_v47 = vld [vmem:[%s4194_s11 + $0x8] sm:$0xff]  }
0x1287   : > { %v3105_v39 = vld [vmem:[%s4195_s12 + $0x8] sm:$0xff]  }
0x12e3   : > { %v1940_v3 = vpop.permute.xlu1 %1939 }
0x12e4   : > { %v3934_v51 = vmul.f32 %v3223_v63, %v1940_v3 }
0x12e6   : > { %v1944_v42 = vsel %vm1943_vm14, %v3934_v51, %v3873_v18 }
0x12e7   : > { %v2035_v29 = vpack.c.bf16 %v1944_v42, %v1944_v42 }
0x12e9   : > { %2037 = vrot.lane.b32.xlu1 %v2035_v29, %s3268_s24 }
0x12f8   : > { %v2022_v44 = vpop.permute.xlu0 %2021 }
0x12f9   : > { %v3942_v56 = vmul.f32 %v3227_v28, %v2022_v44  ;;  %v3107_v44 = vld [vmem:[%s4195_s12 + $0x10] sm:$0xff]  }
0x12fb   : > { %v2026_v61 = vsel %vm4200_vm15, %v3942_v56, %v3885_v50 }
0x12fc   : > { %v2115_v6 = vpack.c.bf16 %v2026_v61, %v2026_v61  ;;  %v3109_v61 = vld [vmem:[%s4195_s12 + $0x18] sm:$0xff]  }
0x12fe   : > { %2117 = vrot.lane.b32.xlu0 %v2115_v6, %s3268_s24  ;;  %v3110_v6 = vld [vmem:[%s4194_s11 + $0x20] sm:$0xff]  }
0x135b   : > { %v2038_v54 = vpop.permute.xlu1 %2037 }
0x135c   : > { %3002 = vmatmul.mubr.msk.bf16.vlgmr.msra.gmra.mrb[44].mxu0 %vm4199_vm1, %v2038_v54  ;;  %v3111_v54 = vld [vmem:[%s4195_s12 + $0x20] sm:$0xff]  }
0x135d   : > { %3029 = vmatprep.mubr.msk.bf16.mxu0 %vm3265_vm0, %v3264_v1 }
0x1370   : > { %v2118_v18 = vpop.permute.xlu0 %2117 }
0x1371   : > { %3010 = vmatmul.mubr.msk.bf16.vlgmr.msra.gmra.mrb[44].mxu1 %vm4199_vm1, %v2118_v18  ;;  %v3112_v18 = vld [vmem:[%s4194_s11 + $0x28] sm:$0xff]  }
0x1372   : > { %3049 = vmatprep.mubr.msk.bf16.mxu1 %vm3265_vm0, %v3264_v1  ;;  %3034 = vmatpush3.bf16.msra.mxu1 %v3103_v25 }
0x1373   : > { %3035 = vmatprep.subr.bf16.mxu1 %v3264_v1 }
0x1376   : > { %3036 = vmatpush3.bf16.msra.mxu1 %v3105_v39 }
0x1377   : > { %3037 = vmatprep.subr.bf16.mxu1 %v3264_v1 }
0x137a   : > { %3038 = vmatpush3.bf16.msra.mxu1 %v3107_v44 }
0x137b   : > { %3039 = vmatprep.subr.bf16.mxu1 %v3264_v1 }
0x137e   : > { %3040 = vmatpush3.bf16.msra.mxu1 %v3109_v61 }
0x137f   : > { %3041 = vmatprep.subr.bf16.mxu1 %v3264_v1 }
0x1382   : > { %3042 = vmatpush3.bf16.msra.mxu1 %v3111_v54 }
0x1383   : > { %3043 = vmatprep.subr.bf16.mxu1 %v3264_v1 }
0x142f   : > { %v2076_v57 = vpop.f32.mrb[44].mxu0 }
0x1430   : > { %v2082_v50 = vadd.f32 %v2076_v57, %v842_v52  ;;  %v3003_v8 = vpop.f32.mrb[45].mxu0  ;;  %v3113_v52 = vld [vmem:[%s4195_s12 + $0x28] sm:$0xff]   ;;  %v3114_v57 = vld [vmem:[%s4194_s11 + $0x30] sm:$0xff]  }
0x1431   : > { %v2079_v46 = vpop.f32.mrb[46].mxu0  ;;  %3044 = vmatpush3.bf16.msra.mxu1 %v3113_v52 }
0x1432   : > { %3232 = vtanh.f32 %v2082_v50  ;;  %v3004_v58 = vpop.f32.mrb[47].mxu0  ;;  %v2793_v38 = vmul.f32 -1.442695, %v2082_v50  ;;  %v3115_v50 = vld [vmem:[%s4195_s12 + $0x30] sm:$0xff]   ;;  %3045 = vmatprep.subr.bf16.mxu1 %v3264_v1 }
0x1433   : > { %v851_v58 = vmax.f32 %v3451_v26, 0.0 }
0x1435   : > { %3046 = vmatpush3.bf16.msra.mxu1 %v3115_v50 }
0x1436   : > { %3047 = vmatprep.subr.bf16.mxu1 %v3264_v1 }
0x143c   : > { %v3233_v12 = vpop.eup %3232 }
0x143d   : > { %2092 = vrot.lane.b32.xlu1 %v3233_v12, %s3267_s17  ;;  %v858_v12 = vmax.f32 %v3453_v32, 0.0 }
0x1444   : > { %v2156_v30 = vpop.f32.mrb[44].mxu1 }
0x1445   : > { %v2162_v0 = vadd.f32 %v2156_v30, %v845_v23  ;;  %v3011_v60 = vpop.f32.mrb[45].mxu1 }
0x1446   : > { %v2159_v34 = vpop.f32.mrb[46].mxu1 }
0x1447   : > { %3234 = vtanh.f32 %v2162_v0  ;;  %v3012_v59 = vpop.f32.mrb[47].mxu1  ;;  %v2795_v33 = vmul.f32 -1.442695, %v2162_v0 }
0x1448   : > { %3236 = vpow2.f32 %v2793_v38 }
0x1451   : > { %v3235_v17 = vpop.eup %3234 }
0x1452   : > { %2172 = vrot.lane.b32.xlu0 %v3235_v17, %s3267_s17  ;;  %v3237_v15 = vpop.eup %3236 }
0x1453   : > { %v2086_v63 = vadd.f32 1.0, %v3237_v15 }
0x1455   : > { %3238 = vrcp.f32 %v2086_v63 }
0x1456   : > { %3240 = vpow2.f32 %v2795_v33 }
0x145f   : > { %v3239_v24 = vpop.eup %3238 }
0x1460   : > { %v3241_v20 = vpop.eup %3240  ;;  %v2090_v21 = vmul.f32 %v3239_v24, %v1945_v5 }
0x1461   : > { %v2166_v40 = vadd.f32 1.0, %v3241_v20 }
0x1463   : > { %3242 = vrcp.f32 %v2166_v40 }
0x146d   : > { %v3243_v28 = vpop.eup %3242 }
0x146e   : > { %v2170_v3 = vmul.f32 %v3243_v28, %v2027_v49 }
0x14af   : > { %v2093_v36 = vpop.permute.xlu1 %2092 }
0x14b0   : > { %v2095_v27 = vmul.f32 %v3239_v24, %v2093_v36 }
0x14b2   : > { %2097 = vrot.lane.b32.xlu1 %v2095_v27, %s3267_s17 }
0x14c4   : > { %v2173_v31 = vpop.permute.xlu0 %2172 }
0x14c5   : > { %v2175_v53 = vmul.f32 %v3243_v28, %v2173_v31 }
0x14c7   : > { %2177 = vrot.lane.b32.xlu0 %v2175_v53, %s3267_s17 }
0x1524   : > { %v2098_v45 = vpop.permute.xlu1 %2097 }
0x1525   : > { %v2100_v55 = vadd.f32 %v2098_v45, %v2090_v21 }
0x1527   : > { %3244 = vtanh.f32 %v2100_v55 }
0x1531   : > { %v3245_v35 = vpop.eup %3244 }
0x1532   : > { %2103 = vrot.lane.b32.xlu1 %v3245_v35, %s3267_s17 }
0x1536   : > { %960 = vrot.lane.b32.xlu1 %v3493_v10, %s3268_s24 }
0x1539   : > { %v2178_v42 = vpop.permute.xlu0 %2177 }
0x153a   : > { %v2180_v29 = vadd.f32 %v2178_v42, %v2170_v3  ;;  %1127 = vrot.lane.b32.xlu1 %v3562_v9, %s3268_s24  ;;  %v3254_v9 = vld [vmem:[%s3463_s21] sm:$0xff] }
0x153b   : > { %vm2196_vm0 = vcmp.lt.s32.totalorder %v3254_v9, %v2195_v37 }
0x153c   : > { %3246 = vtanh.f32 %v2180_v29 }
0x153e   : > { %1291 = vrot.lane.b32.xlu1 %v3631_v62, %s3268_s24  ;;  %v2198_v62 = vsel %vm2196_vm0, 1, %v3266_v4  ;;  %vm2204_vm0 = vcmp.gt.s32.totalorder %v3254_v9, 0 }
0x1542   : > { %1455 = vrot.lane.b32.xlu1 %v3710_v19, %s3268_s24 }
0x1546   : > { %v3247_v10 = vpop.eup %3246  ;;  %1619 = vrot.lane.b32.xlu1 %v3788_v41, %s3268_s24 }
0x1547   : > { %2183 = vrot.lane.b32.xlu0 %v3247_v10, %s3267_s17 }
0x154a   : > { %1783 = vrot.lane.b32.xlu1 %v3866_v48, %s3268_s24 }
0x154b   : > { %1046 = vrot.lane.b32.xlu0 %v3506_v16, %s3268_s24  ;;  %v3255_v16 = vld [vmem:[%s3463_s21 + $0x8] sm:$0xff] }
0x154c   : > { %vm2211_vm1 = vcmp.lt.s32.totalorder %v3255_v16, %v2195_v37  ;;  %vm2219_vm15 = vcmp.gt.s32.totalorder %v3255_v16, 0 }
0x154d   : > { %v2220_v48 = vsel %vm2219_vm15, 1, %v3266_v4 }
0x154e   : > { %1947 = vrot.lane.b32.xlu1 %v3934_v51, %s3268_s24  ;;  %v3106_v51 = vld [vmem:[%s4194_s11 + $0x10] sm:$0xff]  }
0x154f   : > { %1209 = vrot.lane.b32.xlu0 %v3574_v14, %s3268_s24  ;;  %v2213_v14 = vsel %vm2211_vm1, 1, %v3266_v4  ;;  %vm4201_vm1 = vcmp.gt.s32.totalorder %v3504_v13, 6 }
0x1552   : > { %2200 = vperm.xlu1 %3068, %v2198_v62  }
0x1553   : > { %1373 = vrot.lane.b32.xlu0 %v3643_v11, %s3268_s24 }
0x1557   : > { %1537 = vrot.lane.b32.xlu0 %v3722_v22, %s3268_s24  ;;  %v2205_v22 = vsel %vm2204_vm0, 1, %v3266_v4  ;;  %v3102_v4 = vld [vmem:[%s4194_s11] sm:$0xff]  }
0x1558   : > { %3014 = vmatpush3.bf16.msra.mxu0 %v3102_v4 }
0x1559   : > { %3015 = vmatprep.subr.bf16.mxu0 %v3264_v1 }
0x155b   : > { %1701 = vrot.lane.b32.xlu0 %v3800_v43, %s3268_s24 }
0x155c   : > { %3016 = vmatpush3.bf16.msra.mxu0 %v3104_v47 }
0x155d   : > { %3017 = vmatprep.subr.bf16.mxu0 %v3264_v1 }
0x155f   : > { %1865 = vrot.lane.b32.xlu0 %v3878_v2, %s3268_s24  ;;  %v4017_v2 = vld [vmem:[%s593_s23] sm:$0xff]  }
0x1560   : > { %3018 = vmatpush3.bf16.msra.mxu0 %v3106_v51 }
0x1561   : > { %3019 = vmatprep.subr.bf16.mxu0 %v3264_v1 }
0x1563   : > { %2029 = vrot.lane.b32.xlu0 %v3942_v56, %s3268_s24  ;;  %v3108_v56 = vld [vmem:[%s4194_s11 + $0x18] sm:$0xff]  }
0x1564   : > { %3020 = vmatpush3.bf16.msra.mxu0 %v3108_v56 }
0x1565   : > { %3021 = vmatprep.subr.bf16.mxu0 %v3264_v1 }
0x1567   : > { %2215 = vperm.xlu0 %3067, %v2213_v14  }
0x1568   : > { %3022 = vmatpush3.bf16.msra.mxu0 %v3110_v6 }
0x1569   : > { %3023 = vmatprep.subr.bf16.mxu0 %v3264_v1 }
0x156c   : > { %3024 = vmatpush3.bf16.msra.mxu0 %v3112_v18 }
0x156d   : > { %3025 = vmatprep.subr.bf16.mxu0 %v3264_v1 }
0x1570   : > { %3026 = vmatpush3.bf16.msra.mxu0 %v3114_v57 }
0x1571   : > { %3027 = vmatprep.subr.bf16.mxu0 %v3264_v1 }
0x15a4   : > { %v2104_v19 = vpop.permute.xlu1 %2103 }
0x15a5   : > { %v2106_v11 = vmul.f32 %v3239_v24, %v2104_v19 }
0x15a7   : > { %2109 = vrot.lane.b32.xlu1 %v2106_v11, %s3268_s24 }
0x15a8   : > { %v961_v8 = vpop.permute.xlu1 %960 }
0x15a9   : > { %v963_v0 = vmul.f32 %v961_v8, %v851_v58 }
0x15ab   : > { %2207 = vperm.xlu1 %3068, %v2205_v22   ;;  %v964_v17 = vsel %vm952_vm2, %v963_v0, -inf  ;;  %vm2107_vm2 = vcmp.gt.s32.totalorder %v3491_v7, 7  ;;  %v3118_v0 = vld [vmem:[%s4195_s12 + $0x38] sm:$0xff]  }
0x15ac   : > { %v1128_v23 = vpop.permute.xlu1 %1127  ;;  %3048 = vmatpush3.bf16.msra.mxu1 %v3118_v0 }
0x15ad   : > { %v1130_v34 = vmul.f32 %v1128_v23, %v851_v58 }
0x15af   : > { %v1131_v15 = vmax.f32 %v964_v17, %v1130_v34 }
0x15b0   : > { %v1292_v1 = vpop.permute.xlu1 %1291 }
0x15b1   : > { %v1294_v24 = vmul.f32 %v1292_v1, %v851_v58  ;;  %v1132_v32 = vsel %vm1123_vm4, %v1131_v15, %v964_v17 }
0x15b3   : > { %v1295_v27 = vmax.f32 %v1132_v32, %v1294_v24 }
0x15b4   : > { %v1456_v20 = vpop.permute.xlu1 %1455 }
0x15b5   : > { %v1458_v31 = vmul.f32 %v1456_v20, %v851_v58  ;;  %v1296_v5 = vsel %vm1287_vm6, %v1295_v27, %v1132_v32  ;;  %v3116_v32 = vld [vmem:[%s587_s26] sm:$0xff]  }
0x15b7   : > { %v1459_v35 = vmax.f32 %v1296_v5, %v1458_v31 }
0x15b8   : > { %v1620_v45 = vpop.permute.xlu1 %1619 }
0x15b9   : > { %v2184_v41 = vpop.permute.xlu0 %2183  ;;  %v1622_v3 = vmul.f32 %v1620_v45, %v851_v58  ;;  %v1460_v29 = vsel %vm1451_vm8, %v1459_v35, %v1296_v5  ;;  %vm4202_vm8 = vcmask 261120  }
0x15ba   : > { %v2186_v43 = vmul.f32 %v3243_v28, %v2184_v41  ;;  %vm4207_vm15 = vmmov %vm4202_vm8 }
0x15bb   : > { %v1623_v62 = vmax.f32 %v1460_v29, %v1622_v3  ;;  %vm4208_vm0 = vmmov %vm4202_vm8 }
0x15bc   : > { %2189 = vrot.lane.b32.xlu0 %v2186_v43, %s3268_s24  ;;  %v1784_v37 = vpop.permute.xlu1 %1783 }
0x15bd   : > { %v1047_v46 = vpop.permute.xlu0 %1046  ;;  %v1786_v14 = vmul.f32 %v1784_v37, %v851_v58  ;;  %v1624_v11 = vsel %vm1615_vm10, %v1623_v62, %v1460_v29  ;;  %vm2261_vm10 = vcmask 785408  }
0x15be   : > { %v1049_v60 = vmul.f32 %v1047_v46, %v858_v12 }
0x15c0   : > { %2222 = vperm.xlu0 %3067, %v2220_v48   ;;  %v1050_v38 = vsel %vm1038_vm3, %v1049_v60, -inf  ;;  %v1948_v22 = vpop.permute.xlu1 %1947  ;;  %v1787_v48 = vmax.f32 %v1624_v11, %v1786_v14  ;;  %vm2187_vm3 = vcmp.gt.s32.totalorder %v3504_v13, 7 }
0x15c1   : > { %v1210_v30 = vpop.permute.xlu0 %1209  ;;  %v1950_v39 = vmul.f32 %v1948_v22, %v851_v58 }
0x15c2   : > { %v1212_v59 = vmul.f32 %v1210_v30, %v858_v12  ;;  %v1788_v44 = vsel %vm1779_vm12, %v1787_v48, %v1624_v11  ;;  %v2370_v30 = vunpack.c.l.bf16 %v4017_v2  ;;  %vm4204_vm12 = vmmov %vm4202_vm8 }
0x15c3   : > { %v1951_v54 = vmax.f32 %v1788_v44, %v1950_v39 }
0x15c4   : > { %2246 = vrot.lane.b32.xlu0 %v4017_v2, %s3268_s24  ;;  %v1213_v63 = vmax.f32 %v1050_v38, %v1212_v59 }
0x15c5   : > { %v1374_v33 = vpop.permute.xlu0 %1373  ;;  %v1952_v50 = vsel %vm1943_vm14, %v1951_v54, %v1788_v44  ;;  %vm4206_vm14 = vmmov %vm4202_vm8 }
0x15c6   : > { %v1376_v26 = vmul.f32 %v1374_v33, %v858_v12  ;;  %v1214_v36 = vsel %vm1205_vm5, %v1213_v63, %v1050_v38 }
0x15c8   : > { %v1377_v40 = vmax.f32 %v1214_v36, %v1376_v26  ;;  %v3101_v26 = vld [vmem:[%s599_s25] sm:$0xff]  }
0x15c9   : > { %v1538_v28 = vpop.permute.xlu0 %1537 }
0x15ca   : > { %v1540_v53 = vmul.f32 %v1538_v28, %v858_v12  ;;  %v1378_v21 = vsel %vm1369_vm7, %v1377_v40, %v1214_v36 }
0x15cc   : > { %v1541_v49 = vmax.f32 %v1378_v21, %v1540_v53 }
0x15cd   : > { %v1702_v55 = vpop.permute.xlu0 %1701 }
0x15ce   : > { %v1704_v42 = vmul.f32 %v1702_v55, %v858_v12  ;;  %v1542_v10 = vsel %vm1533_vm9, %v1541_v49, %v1378_v21  ;;  %vm2258_vm9 = vcmask 523264  }
0x15d0   : > { %v1705_v16 = vmax.f32 %v1542_v10, %v1704_v42 }
0x15d1   : > { %v1866_v9 = vpop.permute.xlu0 %1865  ;;  %v2201_v25 = vpop.permute.xlu1 %2200 }
0x15d2   : > { %v1868_v19 = vmul.f32 %v1866_v9, %v858_v12  ;;  %v1706_v41 = vsel %vm1697_vm11, %v1705_v16, %v1542_v10  ;;  %vm2202_vm5 = vcmp.eq.s32.totalorder %v2201_v25, 1  ;;  %vm4203_vm11 = vmmov %vm4202_vm8 }
0x15d4   : > { %v1869_v4 = vmax.f32 %v1706_v41, %v1868_v19 }
0x15d5   : > { %v2030_v43 = vpop.permute.xlu0 %2029 }
0x15d6   : > { %v2032_v51 = vmul.f32 %v2030_v43, %v858_v12  ;;  %v1870_v56 = vsel %vm1861_vm13, %v1869_v4, %v1706_v41  ;;  %vm4205_vm13 = vmmov %vm4202_vm8 }
0x15d8   : > { %v2033_v18 = vmax.f32 %v1870_v56, %v2032_v51 }
0x15da   : > { %v2034_v8 = vsel %vm4201_vm1, %v2033_v18, %v1870_v56  ;;  %vm4209_vm1 = vmmov %vm4208_vm0 }
0x15e6   : > { %v2216_v47 = vpop.permute.xlu0 %2215 }
0x15e7   : > { %vm2217_vm6 = vcmp.eq.s32.totalorder %v2216_v47, 1 }
0x1619   : > { %v2110_v61 = vpop.permute.xlu1 %2109 }
0x161a   : > { %v2112_v52 = vmul.f32 %v2110_v61, %v851_v58  ;;  %v2371_v58 = vunpack.c.h.bf16 %v4017_v2 }
0x161c   : > { %v2113_v46 = vmax.f32 %v1952_v50, %v2112_v52  ;;  %v3069_v13 = vpack.i.bf16 %v2371_v58, %v2370_v30 }
0x161e   : > { %v2114_v60 = vsel %vm2107_vm2, %v2113_v46, %v1952_v50  ;;  %3070 = vrot.lane.b32.xlu0 %v3069_v13, %s3267_s17  ;;  %vm4210_vm2 = vmmov %vm4208_vm0 }
0x161f   : > { %v2197_v7 = vmax.f32 %v2114_v60, 0.0 }
0x1621   : > { %v2203_v15 = vsel %vm2202_vm5, %v2197_v7, %v2114_v60  ;;  %vm2454_vm5 = vcmask 23552  }
0x1622   : > { %3080 = vrot.lane.b32.xlu0 %v3069_v13, %s3269_s18 }
0x162a   : > { %v2208_v59 = vpop.permute.xlu1 %2207 }
0x162b   : > { %vm2209_vm4 = vcmp.eq.s32.totalorder %v2208_v59, 1 }
0x162c   : > { %v2210_v63 = vsel %vm2209_vm4, %v2203_v15, 0.0  ;;  %vm2451_vm4 = vcmask 15360  }
0x162e   : > { %v2190_v6 = vpop.permute.xlu0 %2189 }
0x162f   : > { %v2192_v57 = vmul.f32 %v2190_v6, %v858_v12  ;;  %v3117_v12 = vld [vmem:[%s4194_s11 + $0x38] sm:$0xff]  }
0x1630   : > { %3028 = vmatpush3.bf16.msra.mxu0 %v3117_v12 }
0x1631   : > { %v2193_v23 = vmax.f32 %v2034_v8, %v2192_v57 }
0x1633   : > { %v2194_v34 = vsel %vm2187_vm3, %v2193_v23, %v2034_v8  ;;  %vm2448_vm3 = vcmask 7168  }
0x1634   : > { %v2212_v17 = vmax.f32 %v2194_v34, 0.0 }
0x1636   : > { %v2218_v1 = vsel %vm2217_vm6, %v2212_v17, %v2194_v34  ;;  %vm2584_vm6 = vcmask 31744  }
0x163f   : > { %v2223_v38 = vpop.permute.xlu0 %2222 }
0x1640   : > { %vm2224_vm7 = vcmp.eq.s32.totalorder %v2223_v38, 1 }
0x1641   : > { %v2225_v33 = vsel %vm2224_vm7, %v2218_v1, 0.0 }
0x1642   : > { %v2232_v24 = vpack.c.bf16 %v2225_v33, %v2210_v63 }
0x1643   : > { %v2247_v20 = vpop.permute.xlu0 %2246 }
0x1644   : > { %2239 = vrot.lane.b32.xlu1 %v2232_v24, %s3267_s17 }
0x1648   : > { %2253 = vrot.lane.b32.xlu1 %v3101_v26, %s3269_s18 }
0x164c   : > { %3075 = vrot.lane.b32.xlu1 %v3069_v13, %s3268_s24  ;;  %v2815_v13 = vld [vmem:[%s4196_s13] ss:$0 sm:$0xff] }
0x1690   : > { %v3071_v53 = vpop.permute.xlu0 %3070 }
0x1691   : > { %v3072_v5 = vunpack.i.l.bf16 %v3071_v53  ;;  %v3073_v45 = vunpack.i.h.bf16 %v3071_v53 }
0x1694   : > { %v3081_v55 = vpop.permute.xlu0 %3080 }
0x1695   : > { %v3082_v11 = vunpack.i.l.bf16 %v3081_v55  ;;  %v3083_v41 = vunpack.i.h.bf16 %v3081_v55 }
0x16b6   : > { %v2240_v36 = vpop.permute.xlu1 %2239 }
0x16b7   : > { %v2257_v27 = vsel %vm4202_vm8, %v3116_v32, %v2240_v36  ;;  %v2816_v36 = vld [vmem:[%s4197_s14] ss:$0 sm:$0xff] }
0x16b8   : > { %v2260_v40 = vsel %vm2258_vm9, %v2257_v27, %v2247_v20 }
0x16ba   : > { %v2254_v28 = vpop.permute.xlu1 %2253 }
0x16bb   : > { %v2263_v31 = vsel %vm2261_vm10, %v2260_v40, %v2254_v28 }
0x16bc   : > { %3030 = vmatmul.mubr.bf16.vlgmr.msra.gmra.mrb[48].mxu0 %v2263_v31  ;;  %3050 = vmatmul.mubr.bf16.vlgmr.msra.gmra.mrb[48].mxu1 %v2263_v31 }
0x16be   : > { %v3076_v21 = vpop.permute.xlu1 %3075 }
0x16bf   : > { %v3077_v3 = vunpack.i.l.bf16 %v3076_v21  ;;  %v3078_v62 = vunpack.i.h.bf16 %v3076_v21 }
0x178f   : > { %v2363_v35 = vpop.f32.mrb[48].mxu0  ;;  %v4145_v49 = vpop.f32.mrb[48].mxu1 }
0x1790   : > { %v3031_v42 = vpop.f32.mrb[49].mxu0  ;;  %v3051_v29 = vpop.f32.mrb[49].mxu1  ;;  %v2388_v10 = vmul.f32 %v3072_v5, %v2363_v35  ;;  %v2410_v22 = vmul.f32 %v3077_v3, %v2363_v35  ;;  %v2432_v48 = vmul.f32 %v3082_v11, %v2363_v35  ;;  %v2372_v47 = vmul.f32 %v2370_v30, %v2363_v35 }
0x1791   : > { %v2366_v37 = vpop.f32.mrb[50].mxu0  ;;  %v2558_v9 = vpop.f32.mrb[50].mxu1 }
0x1792   : > { %v3052_v16 = vpop.f32.mrb[51].mxu1  ;;  %2392 = vrot.lane.b32.xlu1 %v2388_v10, %s3269_s18  ;;  %v3032_v14 = vpop.f32.mrb[51].mxu0  ;;  %v2389_v19 = vmul.f32 %v3073_v45, %v2366_v37  ;;  %v2411_v43 = vmul.f32 %v3078_v62, %v2366_v37  ;;  %v2433_v4 = vmul.f32 %v3083_v41, %v2366_v37  ;;  %v2373_v25 = vmul.f32 %v2371_v58, %v2366_v37 }
0x1793   : > { %v2374_v51 = vsel %vm4204_vm12, %v2372_v47, 0.0 }
0x1794   : > { %2394 = vrot.lane.b32.xlu0 %v2389_v19, %s3269_s18  ;;  %v2377_v39 = vsel %vm4203_vm11, %v2373_v25, 0.0 }
0x1796   : > { %2414 = vrot.lane.b32.xlu1 %v2410_v22, %s3268_s24 }
0x1798   : > { %2416 = vrot.lane.b32.xlu0 %v2411_v43, %s3268_s24 }
0x179a   : > { %2436 = vrot.lane.b32.xlu1 %v2432_v48, %s3267_s17 }
0x179c   : > { %2438 = vrot.lane.b32.xlu0 %v2433_v4, %s3267_s17 }
0x17bb   : > { %2378 = vadd.xlane.f32.xlu0 %v2377_v39 }
0x17be   : > { %2375 = vadd.xlane.f32.xlu1 %v2374_v51 }
0x1804   : > { %v2393_v44 = vpop.permute.xlu1 %2392 }
0x1805   : > { %v2398_v56 = vsel %vm4205_vm13, %v2393_v44, 0.0 }
0x1806   : > { %v2395_v61 = vpop.permute.xlu0 %2394  ;;  %2399 = vadd.xlane.f32.xlu0 %v2398_v56 }
0x1807   : > { %v2401_v6 = vsel %vm4206_vm14, %v2395_v61, 0.0 }
0x1808   : > { %v2415_v54 = vpop.permute.xlu1 %2414  ;;  %2402 = vadd.xlane.f32.xlu1 %v2401_v6 }
0x1809   : > { %v2420_v18 = vsel %vm4207_vm15, %v2415_v54, 0.0 }
0x180a   : > { %v2417_v52 = vpop.permute.xlu0 %2416  ;;  %2421 = vadd.xlane.f32.xlu0 %v2420_v18 }
0x180b   : > { %v2423_v2 = vsel %vm4208_vm0, %v2417_v52, 0.0 }
0x180c   : > { %v2437_v57 = vpop.permute.xlu1 %2436  ;;  %2424 = vadd.xlane.f32.xlu1 %v2423_v2 }
0x180d   : > { %v2442_v50 = vsel %vm4209_vm1, %v2437_v57, 0.0 }
0x180e   : > { %v2439_v8 = vpop.permute.xlu0 %2438  ;;  %2443 = vadd.xlane.f32.xlu0 %v2442_v50 }
0x180f   : > { %v2445_v46 = vsel %vm4210_vm2, %v2439_v8, 0.0 }
0x1810   : > { %2446 = vadd.xlane.f32.xlu1 %v2445_v46 }
0x1848   : > { %v2379_v23 = vpop.xlane.xlu0 %2378 }
0x184b   : > { %v2376_v30 = vpop.xlane.xlu1 %2375 }
0x1893   : > { %v2400_v58 = vpop.xlane.xlu0 %2399 }
0x1894   : > { %v2449_v34 = vsel %vm2448_vm3, %v2376_v30, %v2400_v58 }
0x1895   : > { %v2403_v12 = vpop.xlane.xlu1 %2402 }
0x1896   : > { %v2450_v17 = vsel %vm2448_vm3, %v2379_v23, %v2403_v12 }
0x1897   : > { %v2422_v0 = vpop.xlane.xlu0 %2421 }
0x1898   : > { %v2452_v59 = vsel %vm2451_vm4, %v2449_v34, %v2422_v0 }
0x1899   : > { %v2425_v60 = vpop.xlane.xlu1 %2424 }
0x189a   : > { %v2453_v15 = vsel %vm2451_vm4, %v2450_v17, %v2425_v60 }
0x189b   : > { %v2444_v7 = vpop.xlane.xlu0 %2443 }
0x189c   : > { %v2455_v38 = vsel %vm2454_vm5, %v2452_v59, %v2444_v7 }
0x189d   : > { %v2562_v1 = vadd.f32 %v4145_v49, %v2455_v38  ;;  %v2447_v63 = vpop.xlane.xlu1 %2446 }
0x189e   : > { %v2456_v33 = vsel %vm2454_vm5, %v2453_v15, %v2447_v63 }
0x189f   : > { %v2571_v24 = vadd.f32 %v2815_v13, %v2562_v1  ;;  %v2563_v26 = vadd.f32 %v2558_v9, %v2456_v33 }
0x18a1   : > { %3248 = vtanh.f32 %v2571_v24  ;;  %v2572_v32 = vadd.f32 %v2815_v13, %v2563_v26 }
0x18a3   : > { %3250 = vtanh.f32 %v2572_v32 }
0x18ab   : > { %v3249_v27 = vpop.eup %3248 }
0x18ac   : > { %v2582_v20 = vmul.f32 %v3249_v27, %v2816_v36 }
0x18ad   : > { %v3251_v40 = vpop.eup %3250 }
0x18ae   : > { %v2585_v28 = vsel %vm2584_vm6, %v2582_v20, 0.0  ;;  %v2583_v31 = vmul.f32 %v3251_v40, %v2816_v36 }
0x18af   : > { %2586 = vadd.xlane.f32.xlu0 %v2585_v28 }
0x18b0   : > { %v2588_v53 = vsel %vm2584_vm6, %v2583_v31, 0.0 }
0x18b1   : > { %2589 = vadd.xlane.f32.xlu1 %v2588_v53 }
0x193c   : > { %v2587_v5 = vpop.xlane.xlu0 %2586 }
0x193d   : > { %2591 = vst.msk [vmem:[%s629_s27] sm:$0xff] %vm2448_vm3, %v2587_v5 }
0x193e   : > { %v2590_v21 = vpop.xlane.xlu1 %2589 }
0x193f   : > { %2592 = vst.msk [vmem:[%s629_s27 + $0x8] sm:$0xff] %vm2448_vm3, %v2590_v21 }
0x1940 PF: > { %s26_s20 = sadd.s32 1, %s3262_s20  }
0x1941   : > { %p23_p5 = scmp.ge.s32.totalorder %s26_s20, 4  }
0x1943   :  { %25 = sbr.rel (!%p23_p5) target bundleno = 2 (0x2), region = 128 }

</bundles_post_ra>
